<compile_context>
chip_gen: v7x
topology: tpu7x:2x2x1
jax: 0.10.0
libtpu: 0.0.40
codegen_flags: <defaults>
</compile_context>

<pallas_src>
import functools

import jax
import jax.numpy as jnp
from jax import lax
from jax.experimental import pallas as pl
from jax.experimental.pallas import tpu as pltpu

EPS = 1e-5
_LANE = 128


# ---------------------------------------------------------------------------
# Small helpers
# ---------------------------------------------------------------------------
def _round_up(x, m):
    return ((x + m - 1) // m) * m


def _vmem_limit_bytes():
    # Generation-aware VMEM budget: leave headroom on v7x (64 MiB / core),
    # use more of v5e/v6e's 128 MiB.
    try:
        cap = int(pltpu.get_tpu_info().vmem_capacity_bytes)
    except Exception:  # noqa: BLE001 - fall back conservatively
        cap = None
    if cap is None:
        return 32 * 1024 * 1024
    if cap >= 100 * 1024 * 1024:
        return 96 * 1024 * 1024
    return 40 * 1024 * 1024


def _compiler_params(dims):
    return pltpu.CompilerParams(dimension_semantics=dims,
                                vmem_limit_bytes=_vmem_limit_bytes())


def _pick_row_tile(m):
    """Row tile for the 1x1 matmuls: never below 256 once m >= 512."""
    if m <= 512:
        return _round_up(max(m, 8), 8)
    best_tm, best_padded = 256, _round_up(m, 256)
    for tm in (512, 448, 384, 320):
        padded = _round_up(m, tm)
        if padded < best_padded or (padded == best_padded and tm > best_tm):
            best_tm, best_padded = tm, padded
    return best_tm


def _pick_chunk(ho, ph_w):
    """Output-row chunk for the fused conv kernel (keeps the f32 acc small)."""
    best = 1
    for t in range(1, ho + 1):
        if ho % t == 0 and t * ph_w <= 256:
            best = t
    return best


# ---------------------------------------------------------------------------
# Pallas kernels
# ---------------------------------------------------------------------------
def _mm_bn_kernel(x_ref, w_ref, b_ref, o_ref, *, relu):
    """out = act((x @ w_folded) + shift)   -- 1x1 conv + folded BN."""
    y = jnp.dot(x_ref[...], w_ref[...], preferred_element_type=jnp.float32)
    y = y + b_ref[...]
    if relu:
        y = jnp.maximum(y, 0.0)
    o_ref[...] = y.astype(o_ref.dtype)


def _mm_bn_add_relu_kernel(x_ref, w_ref, b_ref, r_ref, o_ref):
    """out = relu((x @ w_folded) + shift + residual)  -- conv3 + BN + skip."""
    y = jnp.dot(x_ref[...], w_ref[...], preferred_element_type=jnp.float32)
    y = y + b_ref[...] + r_ref[...].astype(jnp.float32)
    o_ref[...] = jnp.maximum(y, 0.0).astype(o_ref.dtype)


def _conv12_kernel(x_ref, m_ref, w1_ref, b1_ref, w2_ref, b2_ref, o_ref, y1_ref,
                   *, stride, th, wo):
    """Fused conv1(1x1)+BN1+ReLU  ->  conv2(3x3, pad=1, stride)+BN2+ReLU.

    x_ref : (nphase, ph_h, ph_w, Cin)   phase-split, halo-padded bf16 input
    m_ref : (nphase, ph_h*ph_w, 1)      interior mask (zeros out halo/pad cols)
    w1_ref: (Cin, Cmid)                 folded bf16 weights
    w2_ref: (9, Cmid, Cmid)             per-tap folded bf16 weights
    o_ref : (1, th, wo, Cmid)           output row chunk
    y1_ref: (nphase, scr_rows, Cmid)    per-phase flat y1 scratch (bf16)
    """
    s = stride
    nphase, _, phw, cin = x_ref.shape
    cmid = w1_ref.shape[1]
    max_hoff = 2 // s
    rows = th + max_hoff
    flat = rows * phw

    r0 = pl.program_id(1) * th                 # first output row of this chunk
    off = pl.multiple_of(r0 * phw, 8)          # aligned flat offset into mask

    # ---- conv1 for exactly the y1 rows this chunk needs (per phase) --------
    for ph in range(nphase):
        xs = x_ref[ph, pl.ds(r0, rows), :, :].reshape(flat, cin)
        msk = m_ref[ph, pl.ds(off, flat), :]
        y1 = jnp.dot(xs, w1_ref[...], preferred_element_type=jnp.float32)
        y1 = jnp.maximum(y1 + b1_ref[...], 0.0) * msk
        y1_ref[ph, :flat, :] = y1.astype(y1_ref.dtype)

    # ---- conv2: 9 accumulating MXU matmuls over flat, contiguous slices ----
    acc = jnp.zeros((th * phw, cmid), jnp.float32)
    for ky in range(3):
        p, hoff = ky % s, ky // s
        for kx in range(3):
            q, woff = kx % s, kx // s
            start = hoff * phw + woff
            # TODO(synk): the woff != 0 taps start at a non-multiple-of-8
            # sublane offset; a pltpu.roll of the matmul result would keep
            # every load aligned at the cost of one XLU rotate per tap.
            slab = y1_ref[p * s + q, start:start + th * phw, :]
            acc = acc + jnp.dot(slab, w2_ref[ky * 3 + kx],
                                preferred_element_type=jnp.float32)

    y2 = jnp.maximum(acc + b2_ref[...], 0.0).astype(o_ref.dtype)
    o_ref[0] = y2.reshape(th, phw, cmid)[:, :wo, :]


# ---------------------------------------------------------------------------
# Pallas wrappers
# ---------------------------------------------------------------------------
def matmul_bn_act(x2d, w, shift, *, relu, out_dtype):
    m, k = x2d.shape
    nn = w.shape[1]
    tm = _pick_row_tile(m)
    mp = _round_up(m, tm)
    if mp != m:
        x2d = jnp.pad(x2d, ((0, mp - m), (0, 0)))
    out = pl.pallas_call(
        functools.partial(_mm_bn_kernel, relu=relu),
        out_shape=jax.ShapeDtypeStruct((mp, nn), out_dtype),
        grid=(mp // tm,),
        in_specs=[
            pl.BlockSpec((tm, k), lambda i: (i, 0)),
            pl.BlockSpec((k, nn), lambda i: (0, 0)),
            pl.BlockSpec((1, nn), lambda i: (0, 0)),
        ],
        out_specs=pl.BlockSpec((tm, nn), lambda i: (i, 0)),
        compiler_params=_compiler_params(("parallel",)),
    )(x2d, w, shift)
    return out[:m] if mp != m else out


def matmul_bn_add_relu(x2d, w, shift, res2d, *, out_dtype):
    m, k = x2d.shape
    nn = w.shape[1]
    tm = _pick_row_tile(m)
    mp = _round_up(m, tm)
    if mp != m:
        x2d = jnp.pad(x2d, ((0, mp - m), (0, 0)))
        res2d = jnp.pad(res2d, ((0, mp - m), (0, 0)))
    out = pl.pallas_call(
        _mm_bn_add_relu_kernel,
        out_shape=jax.ShapeDtypeStruct((mp, nn), out_dtype),
        grid=(mp // tm,),
        in_specs=[
            pl.BlockSpec((tm, k), lambda i: (i, 0)),
            pl.BlockSpec((k, nn), lambda i: (0, 0)),
            pl.BlockSpec((1, nn), lambda i: (0, 0)),
            pl.BlockSpec((tm, nn), lambda i: (i, 0)),
        ],
        out_specs=pl.BlockSpec((tm, nn), lambda i: (i, 0)),
        compiler_params=_compiler_params(("parallel",)),
    )(x2d, w, shift, res2d)
    return out[:m] if mp != m else out


def conv1_conv2(xph, mask, w1, b1, w2, b2, *, stride, ho, wo, th):
    """Fused conv1+BN1+ReLU -> conv2(3x3, stride)+BN2+ReLU.

    xph : (n*nphase, ph_h, ph_w, cin) bf16 (phase-split, halo-padded NHWC x)
    Returns (n, ho, wo, cmid_p) bf16.
    """
    n_nph, ph_h, ph_w, cin = xph.shape
    nphase = stride * stride
    n = n_nph // nphase
    cmid = w1.shape[1]
    nchunk = ho // th
    rows = th + 2 // stride
    scr_rows = (rows + 1) * ph_w       # +1 row of slack for the woff>0 tap reads
    return pl.pallas_call(
        functools.partial(_conv12_kernel, stride=stride, th=th, wo=wo),
        out_shape=jax.ShapeDtypeStruct((n, ho, wo, cmid), jnp.bfloat16),
        grid=(n, nchunk),
        in_specs=[
            pl.BlockSpec((nphase, ph_h, ph_w, cin), lambda i, j: (i, 0, 0, 0)),
            pl.BlockSpec((nphase, ph_h * ph_w, 1), lambda i, j: (0, 0, 0)),
            pl.BlockSpec((cin, cmid), lambda i, j: (0, 0)),
            pl.BlockSpec((1, cmid), lambda i, j: (0, 0)),
            pl.BlockSpec((9, cmid, cmid), lambda i, j: (0, 0, 0)),
            pl.BlockSpec((1, cmid), lambda i, j: (0, 0)),
        ],
        out_specs=pl.BlockSpec((1, th, wo, cmid), lambda i, j: (i, j, 0, 0)),
        scratch_shapes=[pltpu.VMEM((nphase, scr_rows, cmid), jnp.bfloat16)],
        compiler_params=_compiler_params(("parallel", "parallel")),
    )(xph, mask, w1, b1, w2, b2)


# ---------------------------------------------------------------------------
# Glue: BN folding, weight prep (bf16 + lane padding), params
# ---------------------------------------------------------------------------
def _fold_bn(bn):
    gamma, beta, mean, var = bn
    scale = gamma / jnp.sqrt(var + EPS)
    shift = beta - mean * scale
    return scale, shift


def _prep_1x1(w_oihw, bn, k_pad, n_pad):
    scale, shift = _fold_bn(bn)
    w = jnp.transpose(w_oihw[:, :, 0, 0], (1, 0)) * scale[None, :]     # (K, N)
    k, nn = w.shape
    w = jnp.pad(w, ((0, k_pad - k), (0, n_pad - nn))).astype(jnp.bfloat16)
    shift = jnp.pad(shift, (0, n_pad - nn)).reshape(1, -1).astype(jnp.float32)
    return w, shift


def _prep_3x3(w_oihw, bn, k_pad, n_pad):
    scale, shift = _fold_bn(bn)
    w = jnp.transpose(w_oihw, (2, 3, 1, 0)) * scale[None, None, None, :]  # (3,3,I,O)
    _, _, ci, co = w.shape
    w = w.reshape(9, ci, co)
    w = jnp.pad(w, ((0, 0), (0, k_pad - ci), (0, n_pad - co))).astype(jnp.bfloat16)
    shift = jnp.pad(shift, (0, n_pad - co)).reshape(1, -1).astype(jnp.float32)
    return w, shift


def init_params(key, in_channels, out_channels, stride):
    expansion = 4
    cexp = out_channels * expansion
    ks = jax.random.split(key, 8)

    def bn(k, c):
        k1, k2, k3, k4 = jax.random.split(k, 4)
        gamma = 1.0 + 0.1 * jax.random.normal(k1, (c,), jnp.float32)
        beta = 0.1 * jax.random.normal(k2, (c,), jnp.float32)
        mean = 0.1 * jax.random.normal(k3, (c,), jnp.float32)
        var = jnp.abs(jax.random.normal(k4, (c,), jnp.float32)) + 0.5
        return gamma, beta, mean, var

    p = {"stride": stride}
    p["w1"] = 0.1 * jax.random.normal(ks[0], (out_channels, in_channels, 1, 1), jnp.float32)
    p["bn1"] = bn(ks[1], out_channels)
    p["w2"] = 0.1 * jax.random.normal(ks[2], (out_channels, out_channels, 3, 3), jnp.float32)
    p["bn2"] = bn(ks[3], out_channels)
    p["w3"] = 0.1 * jax.random.normal(ks[4], (cexp, out_channels, 1, 1), jnp.float32)
    p["bn3"] = bn(ks[5], cexp)
    p["has_downsample"] = (stride != 1) or (in_channels != cexp)
    if p["has_downsample"]:
        p["wd"] = 0.1 * jax.random.normal(ks[6], (cexp, in_channels, 1, 1), jnp.float32)
        p["bnd"] = bn(ks[7], cexp)
    return p


# ---------------------------------------------------------------------------
# Forward pass
# ---------------------------------------------------------------------------
def bottleneck_forward(x_nchw, p):
    # TODO(synk): BatchNorm is folded in eval (running-stats) mode; a freshly
    # constructed PyTorch module in train() mode would use batch statistics.
    n, cin, h, w = x_nchw.shape
    s = p["stride"]
    cmid = p["w1"].shape[0]
    cexp = p["w3"].shape[0]
    cmid_p = _round_up(cmid, _LANE)

    ho = (h - 1) // s + 1
    wo = (w - 1) // s + 1

    # ---- single layout pass over x: NCHW -> (halo-padded, phase-split) NHWC bf16
    ph_h = -(-(h + 2) // s)                      # ceil((h+2)/s)
    ph_w = _round_up(-(-(w + 2) // s), 8)        # sublane-aligned phase width
    xpad = jnp.pad(x_nchw, ((0, 0), (0, 0),
                            (1, ph_h * s - (h + 1)),
                            (1, ph_w * s - (w + 1))))
    xph = xpad.reshape(n, cin, ph_h, s, ph_w, s)
    xph = jnp.transpose(xph, (0, 3, 5, 2, 4, 1))          # (n, s, s, ph_h, ph_w, cin)
    xph = xph.reshape(n * s * s, ph_h, ph_w, cin).astype(jnp.bfloat16)

    # interior mask for y1 (zeros the conv2 halo and the alignment padding)
    yy = jnp.arange(ph_h)[:, None]
    xx = jnp.arange(ph_w)[None, :]
    mask = []
    for pph in range(s):
        for q in range(s):
            py = yy * s + pph
            px = xx * s + q
            mask.append((py >= 1) & (py <= h) & (px >= 1) & (px <= w))
    mask = jnp.stack(mask).reshape(s * s, ph_h * ph_w, 1).astype(jnp.float32)

    th = _pick_chunk(ho, ph_w)

    # conv1 + conv2 fused (y1 never leaves VMEM)
    w1, b1 = _prep_1x1(p["w1"], p["bn1"], k_pad=cin, n_pad=cmid_p)
    w2, b2 = _prep_3x3(p["w2"], p["bn2"], k_pad=cmid_p, n_pad=cmid_p)
    y2 = conv1_conv2(xph, mask, w1, b1, w2, b2, stride=s, ho=ho, wo=wo, th=th)
    y2_2d = y2.reshape(n * ho * wo, cmid_p)

    # residual branch (bf16 everywhere)
    if p["has_downsample"]:
        if s != 1:
            assert h % s == 0 and w % s == 0, "AvgPool2d(stride) needs divisible spatial dims"
            # TODO(synk): the AvgPool2d(stride) stays a wrapper-level XLA reduce
            # instead of being fused into the downsample matmul kernel.
            pooled = x_nchw.reshape(n, cin, ho, s, wo, s).mean(axis=(3, 5))
        else:
            pooled = x_nchw
        ident2d = jnp.transpose(pooled, (0, 2, 3, 1)).reshape(-1, cin).astype(jnp.bfloat16)
        wd, bd = _prep_1x1(p["wd"], p["bnd"], k_pad=cin, n_pad=cexp)
        ident2d = matmul_bn_act(ident2d, wd, bd, relu=False, out_dtype=jnp.bfloat16)
    else:
        ident2d = jnp.transpose(x_nchw, (0, 2, 3, 1)).reshape(-1, cin).astype(jnp.bfloat16)

    # conv3 (1x1) + BN3 fused with residual add + final ReLU (exactly cexp lanes)
    w3, b3 = _prep_1x1(p["w3"], p["bn3"], k_pad=cmid_p, n_pad=cexp)
    out2d = matmul_bn_add_relu(y2_2d, w3, b3, ident2d, out_dtype=jnp.float32)

    out = out2d.reshape(n, ho, wo, cexp)
    return jnp.transpose(out, (0, 3, 1, 2))               # back to NCHW


# ---------------------------------------------------------------------------
# Pure-JAX reference (for verification)
# ---------------------------------------------------------------------------
def _ref_conv(x, w, stride, padding):
    return lax.conv_general_dilated(
        x, w, (stride, stride), [(padding, padding)] * 2,
        dimension_numbers=("NCHW", "OIHW", "NCHW"))


def _ref_bn(x, gamma, beta, mean, var):
    g = gamma[None, :, None, None]
    b = beta[None, :, None, None]
    m = mean[None, :, None, None]
    v = var[None, :, None, None]
    return (x - m) / jnp.sqrt(v + EPS) * g + b


def bottleneck_reference(x, p):
    y = jax.nn.relu(_ref_bn(_ref_conv(x, p["w1"], 1, 0), *p["bn1"]))
    y = jax.nn.relu(_ref_bn(_ref_conv(y, p["w2"], p["stride"], 1), *p["bn2"]))
    y = _ref_bn(_ref_conv(y, p["w3"], 1, 0), *p["bn3"])
    ident = x
    if p["has_downsample"]:
        s = p["stride"]
        if s != 1:
            n, c, h, w = x.shape
            ident = x.reshape(n, c, h // s, s, w // s, s).mean(axis=(3, 5))
        ident = _ref_bn(_ref_conv(ident, p["wd"], 1, 0), *p["bnd"])
    return jax.nn.relu(y + ident)


# ---------------------------------------------------------------------------
if __name__ == "__main__":
    key = jax.random.PRNGKey(0)
    kx, kp = jax.random.split(key)

    N, Cin, H, W = 2, 16, 16, 16
    out_channels, stride = 8, 2

    x = jax.random.normal(kx, (N, Cin, H, W), jnp.float32)  # NCHW input
    params = init_params(kp, Cin, out_channels, stride)

    out = bottleneck_forward(x, params)
    out = jax.block_until_ready(out)

    ref = jax.block_until_ready(bottleneck_reference(x, params))
    assert out.shape == ref.shape == (N, out_channels * 4, H // stride, W // stride)
    err = float(jnp.max(jnp.abs(out - ref)))
    assert jnp.allclose(out, ref, rtol=5e-2, atol=5e-2), err

    print("KERNEL_OK")
</pallas_src>

<mosaic_0001>
module attributes {stable_mosaic.version = 11 : i64} {
  func.func @_conv12_kernel(%arg0: i32, %arg1: i32, %arg2: memref<4x9x16x16xbf16, #tpu.memory_space<vmem>>, %arg3: memref<4x144x1xf32, #tpu.memory_space<vmem>>, %arg4: memref<16x128xbf16, #tpu.memory_space<vmem>>, %arg5: memref<1x128xf32, #tpu.memory_space<vmem>>, %arg6: memref<9x128x128xbf16, #tpu.memory_space<vmem>>, %arg7: memref<1x128xf32, #tpu.memory_space<vmem>>, %arg8: memref<1x8x8x128xbf16, #tpu.memory_space<vmem>>, %arg9: memref<4x160x128xbf16, #tpu.memory_space<vmem>>) attributes {dimension_semantics = [#tpu.dimension_semantics<parallel>, #tpu.dimension_semantics<parallel>], iteration_bounds = array<i64: 2, 1>, scalar_prefetch = 0 : i64, scratch_operands = 1 : i64, tpu.core_type = #tpu.core_type<tc>, window_params = [{transform_indices = @transform_0, window_bounds = array<i64: 4, 9, 16, 16>}, {pipeline_mode = #tpu.pipeline_mode<synchronous>, transform_indices = @transform_1, window_bounds = array<i64: 4, 144, 1>}, {pipeline_mode = #tpu.pipeline_mode<synchronous>, transform_indices = @transform_2, window_bounds = array<i64: 16, 128>}, {pipeline_mode = #tpu.pipeline_mode<synchronous>, transform_indices = @transform_3, window_bounds = array<i64: 1, 128>}, {pipeline_mode = #tpu.pipeline_mode<synchronous>, transform_indices = @transform_4, window_bounds = array<i64: 9, 128, 128>}, {pipeline_mode = #tpu.pipeline_mode<synchronous>, transform_indices = @transform_5, window_bounds = array<i64: 1, 128>}, {transform_indices = @transform_6, window_bounds = array<i64: 1, 8, 8, 128>}]} {
    %c8_i32 = arith.constant 8 : i32
    %0 = arith.muli %arg1, %c8_i32 : i32
    %c16_i32 = arith.constant 16 : i32
    %1 = arith.muli %0, %c16_i32 : i32
    %2 = tpu.assume_multiple %1, 8 : i32
    %c0 = arith.constant 0 : index
    %3 = arith.index_cast %0 : i32 to index
    %c0_0 = arith.constant 0 : index
    %c0_1 = arith.constant 0 : index
    %4 = vector.load %arg2[%c0, %3, %c0_0, %c0_1] : memref<4x9x16x16xbf16, #tpu.memory_space<vmem>>, vector<1x9x16x16xbf16>
    %5 = vector.shape_cast %4 : vector<1x9x16x16xbf16> to vector<9x16x16xbf16>
    %6 = vector.shape_cast %5 : vector<9x16x16xbf16> to vector<144x16xbf16>
    %c0_2 = arith.constant 0 : index
    %7 = arith.index_cast %2 : i32 to index
    %c0_3 = arith.constant 0 : index
    %8 = vector.load %arg3[%c0_2, %7, %c0_3] : memref<4x144x1xf32, #tpu.memory_space<vmem>>, vector<1x144x1xf32>
    %9 = vector.shape_cast %8 : vector<1x144x1xf32> to vector<144x1xf32>
    %c0_4 = arith.constant 0 : index
    %c0_5 = arith.constant 0 : index
    %10 = vector.load %arg4[%c0_4, %c0_5] : memref<16x128xbf16, #tpu.memory_space<vmem>>, vector<16x128xbf16>
    %cst = arith.constant dense<0.000000e+00> : vector<144x128xf32>
    %11 = tpu.matmul %6, %10, %cst {dimension_numbers = #tpu.dot_dimension_numbers<[1], [0], [0], [1], [0, 0, 1, 1], [], []>} : vector<144x16xbf16>, vector<16x128xbf16>, vector<144x128xf32> -> vector<144x128xf32>
    %c0_6 = arith.constant 0 : index
    %c0_7 = arith.constant 0 : index
    %12 = vector.load %arg5[%c0_6, %c0_7] : memref<1x128xf32, #tpu.memory_space<vmem>>, vector<1x128xf32>
    %13 = vector.broadcast %12 : vector<1x128xf32> to vector<144x128xf32>
    %14 = arith.addf %11, %13 : vector<144x128xf32>
    %cst_8 = arith.constant 0.000000e+00 : f32
    %15 = vector.broadcast %cst_8 : f32 to vector<144x128xf32>
    %16 = arith.maximumf %14, %15 : vector<144x128xf32>
    %17 = vector.broadcast %9 : vector<144x1xf32> to vector<144x128xf32>
    %18 = arith.mulf %16, %17 : vector<144x128xf32>
    %19 = arith.truncf %18 : vector<144x128xf32> to vector<144x128xbf16>
    %c0_9 = arith.constant 0 : index
    %c0_10 = arith.constant 0 : index
    %c0_11 = arith.constant 0 : index
    %20 = vector.load %arg9[%c0_9, %c0_10, %c0_11] : memref<4x160x128xbf16, #tpu.memory_space<vmem>>, vector<1x144x128xbf16>
    %21 = vector.shape_cast %20 : vector<1x144x128xbf16> to vector<144x128xbf16>
    %22 = vector.shape_cast %19 : vector<144x128xbf16> to vector<1x144x128xbf16>
    tpu.vector_store %arg9[%c0_9, %c0_10, %c0_11], %22 {strides = array<i32>} : memref<4x160x128xbf16, #tpu.memory_space<vmem>>, vector<1x144x128xbf16>,
    %c1 = arith.constant 1 : index
    %23 = arith.index_cast %0 : i32 to index
    %c0_12 = arith.constant 0 : index
    %c0_13 = arith.constant 0 : index
    %24 = vector.load %arg2[%c1, %23, %c0_12, %c0_13] : memref<4x9x16x16xbf16, #tpu.memory_space<vmem>>, vector<1x9x16x16xbf16>
    %25 = vector.shape_cast %24 : vector<1x9x16x16xbf16> to vector<9x16x16xbf16>
    %26 = vector.shape_cast %25 : vector<9x16x16xbf16> to vector<144x16xbf16>
    %c1_14 = arith.constant 1 : index
    %27 = arith.index_cast %2 : i32 to index
    %c0_15 = arith.constant 0 : index
    %28 = vector.load %arg3[%c1_14, %27, %c0_15] : memref<4x144x1xf32, #tpu.memory_space<vmem>>, vector<1x144x1xf32>
    %29 = vector.shape_cast %28 : vector<1x144x1xf32> to vector<144x1xf32>
    %c0_16 = arith.constant 0 : index
    %c0_17 = arith.constant 0 : index
    %30 = vector.load %arg4[%c0_16, %c0_17] : memref<16x128xbf16, #tpu.memory_space<vmem>>, vector<16x128xbf16>
    %cst_18 = arith.constant dense<0.000000e+00> : vector<144x128xf32>
    %31 = tpu.matmul %26, %30, %cst_18 {dimension_numbers = #tpu.dot_dimension_numbers<[1], [0], [0], [1], [0, 0, 1, 1], [], []>} : vector<144x16xbf16>, vector<16x128xbf16>, vector<144x128xf32> -> vector<144x128xf32>
    %c0_19 = arith.constant 0 : index
    %c0_20 = arith.constant 0 : index
    %32 = vector.load %arg5[%c0_19, %c0_20] : memref<1x128xf32, #tpu.memory_space<vmem>>, vector<1x128xf32>
    %33 = vector.broadcast %32 : vector<1x128xf32> to vector<144x128xf32>
    %34 = arith.addf %31, %33 : vector<144x128xf32>
    %cst_21 = arith.constant 0.000000e+00 : f32
    %35 = vector.broadcast %cst_21 : f32 to vector<144x128xf32>
    %36 = arith.maximumf %34, %35 : vector<144x128xf32>
    %37 = vector.broadcast %29 : vector<144x1xf32> to vector<144x128xf32>
    %38 = arith.mulf %36, %37 : vector<144x128xf32>
    %39 = arith.truncf %38 : vector<144x128xf32> to vector<144x128xbf16>
    %c1_22 = arith.constant 1 : index
    %c0_23 = arith.constant 0 : index
    %c0_24 = arith.constant 0 : index
    %40 = vector.load %arg9[%c1_22, %c0_23, %c0_24] : memref<4x160x128xbf16, #tpu.memory_space<vmem>>, vector<1x144x128xbf16>
    %41 = vector.shape_cast %40 : vector<1x144x128xbf16> to vector<144x128xbf16>
    %42 = vector.shape_cast %39 : vector<144x128xbf16> to vector<1x144x128xbf16>
    tpu.vector_store %arg9[%c1_22, %c0_23, %c0_24], %42 {strides = array<i32>} : memref<4x160x128xbf16, #tpu.memory_space<vmem>>, vector<1x144x128xbf16>,
    %c2 = arith.constant 2 : index
    %43 = arith.index_cast %0 : i32 to index
    %c0_25 = arith.constant 0 : index
    %c0_26 = arith.constant 0 : index
    %44 = vector.load %arg2[%c2, %43, %c0_25, %c0_26] : memref<4x9x16x16xbf16, #tpu.memory_space<vmem>>, vector<1x9x16x16xbf16>
    %45 = vector.shape_cast %44 : vector<1x9x16x16xbf16> to vector<9x16x16xbf16>
    %46 = vector.shape_cast %45 : vector<9x16x16xbf16> to vector<144x16xbf16>
    %c2_27 = arith.constant 2 : index
    %47 = arith.index_cast %2 : i32 to index
    %c0_28 = arith.constant 0 : index
    %48 = vector.load %arg3[%c2_27, %47, %c0_28] : memref<4x144x1xf32, #tpu.memory_space<vmem>>, vector<1x144x1xf32>
    %49 = vector.shape_cast %48 : vector<1x144x1xf32> to vector<144x1xf32>
    %c0_29 = arith.constant 0 : index
    %c0_30 = arith.constant 0 : index
    %50 = vector.load %arg4[%c0_29, %c0_30] : memref<16x128xbf16, #tpu.memory_space<vmem>>, vector<16x128xbf16>
    %cst_31 = arith.constant dense<0.000000e+00> : vector<144x128xf32>
    %51 = tpu.matmul %46, %50, %cst_31 {dimension_numbers = #tpu.dot_dimension_numbers<[1], [0], [0], [1], [0, 0, 1, 1], [], []>} : vector<144x16xbf16>, vector<16x128xbf16>, vector<144x128xf32> -> vector<144x128xf32>
    %c0_32 = arith.constant 0 : index
    %c0_33 = arith.constant 0 : index
    %52 = vector.load %arg5[%c0_32, %c0_33] : memref<1x128xf32, #tpu.memory_space<vmem>>, vector<1x128xf32>
    %53 = vector.broadcast %52 : vector<1x128xf32> to vector<144x128xf32>
    %54 = arith.addf %51, %53 : vector<144x128xf32>
    %cst_34 = arith.constant 0.000000e+00 : f32
    %55 = vector.broadcast %cst_34 : f32 to vector<144x128xf32>
    %56 = arith.maximumf %54, %55 : vector<144x128xf32>
    %57 = vector.broadcast %49 : vector<144x1xf32> to vector<144x128xf32>
    %58 = arith.mulf %56, %57 : vector<144x128xf32>
    %59 = arith.truncf %58 : vector<144x128xf32> to vector<144x128xbf16>
    %c2_35 = arith.constant 2 : index
    %c0_36 = arith.constant 0 : index
    %c0_37 = arith.constant 0 : index
    %60 = vector.load %arg9[%c2_35, %c0_36, %c0_37] : memref<4x160x128xbf16, #tpu.memory_space<vmem>>, vector<1x144x128xbf16>
    %61 = vector.shape_cast %60 : vector<1x144x128xbf16> to vector<144x128xbf16>
    %62 = vector.shape_cast %59 : vector<144x128xbf16> to vector<1x144x128xbf16>
    tpu.vector_store %arg9[%c2_35, %c0_36, %c0_37], %62 {strides = array<i32>} : memref<4x160x128xbf16, #tpu.memory_space<vmem>>, vector<1x144x128xbf16>,
    %c3 = arith.constant 3 : index
    %63 = arith.index_cast %0 : i32 to index
    %c0_38 = arith.constant 0 : index
    %c0_39 = arith.constant 0 : index
    %64 = vector.load %arg2[%c3, %63, %c0_38, %c0_39] : memref<4x9x16x16xbf16, #tpu.memory_space<vmem>>, vector<1x9x16x16xbf16>
    %65 = vector.shape_cast %64 : vector<1x9x16x16xbf16> to vector<9x16x16xbf16>
    %66 = vector.shape_cast %65 : vector<9x16x16xbf16> to vector<144x16xbf16>
    %c3_40 = arith.constant 3 : index
    %67 = arith.index_cast %2 : i32 to index
    %c0_41 = arith.constant 0 : index
    %68 = vector.load %arg3[%c3_40, %67, %c0_41] : memref<4x144x1xf32, #tpu.memory_space<vmem>>, vector<1x144x1xf32>
    %69 = vector.shape_cast %68 : vector<1x144x1xf32> to vector<144x1xf32>
    %c0_42 = arith.constant 0 : index
    %c0_43 = arith.constant 0 : index
    %70 = vector.load %arg4[%c0_42, %c0_43] : memref<16x128xbf16, #tpu.memory_space<vmem>>, vector<16x128xbf16>
    %cst_44 = arith.constant dense<0.000000e+00> : vector<144x128xf32>
    %71 = tpu.matmul %66, %70, %cst_44 {dimension_numbers = #tpu.dot_dimension_numbers<[1], [0], [0], [1], [0, 0, 1, 1], [], []>} : vector<144x16xbf16>, vector<16x128xbf16>, vector<144x128xf32> -> vector<144x128xf32>
    %c0_45 = arith.constant 0 : index
    %c0_46 = arith.constant 0 : index
    %72 = vector.load %arg5[%c0_45, %c0_46] : memref<1x128xf32, #tpu.memory_space<vmem>>, vector<1x128xf32>
    %73 = vector.broadcast %72 : vector<1x128xf32> to vector<144x128xf32>
    %74 = arith.addf %71, %73 : vector<144x128xf32>
    %cst_47 = arith.constant 0.000000e+00 : f32
    %75 = vector.broadcast %cst_47 : f32 to vector<144x128xf32>
    %76 = arith.maximumf %74, %75 : vector<144x128xf32>
    %77 = vector.broadcast %69 : vector<144x1xf32> to vector<144x128xf32>
    %78 = arith.mulf %76, %77 : vector<144x128xf32>
    %79 = arith.truncf %78 : vector<144x128xf32> to vector<144x128xbf16>
    %c3_48 = arith.constant 3 : index
    %c0_49 = arith.constant 0 : index
    %c0_50 = arith.constant 0 : index
    %80 = vector.load %arg9[%c3_48, %c0_49, %c0_50] : memref<4x160x128xbf16, #tpu.memory_space<vmem>>, vector<1x144x128xbf16>
    %81 = vector.shape_cast %80 : vector<1x144x128xbf16> to vector<144x128xbf16>
    %82 = vector.shape_cast %79 : vector<144x128xbf16> to vector<1x144x128xbf16>
    tpu.vector_store %arg9[%c3_48, %c0_49, %c0_50], %82 {strides = array<i32>} : memref<4x160x128xbf16, #tpu.memory_space<vmem>>, vector<1x144x128xbf16>,
    %cst_51 = arith.constant 0.000000e+00 : f32
    %83 = vector.broadcast %cst_51 : f32 to vector<128x128xf32>
    %c0_52 = arith.constant 0 : index
    %c0_53 = arith.constant 0 : index
    %c0_54 = arith.constant 0 : index
    %84 = vector.load %arg9[%c0_52, %c0_53, %c0_54] : memref<4x160x128xbf16, #tpu.memory_space<vmem>>, vector<1x128x128xbf16>
    %85 = vector.shape_cast %84 : vector<1x128x128xbf16> to vector<128x128xbf16>
    %c0_55 = arith.constant 0 : index
    %c0_56 = arith.constant 0 : index
    %c0_57 = arith.constant 0 : index
    %86 = vector.load %arg6[%c0_55, %c0_56, %c0_57] : memref<9x128x128xbf16, #tpu.memory_space<vmem>>, vector<1x128x128xbf16>
    %87 = vector.shape_cast %86 : vector<1x128x128xbf16> to vector<128x128xbf16>
    %cst_58 = arith.constant dense<0.000000e+00> : vector<128x128xf32>
    %88 = tpu.matmul %85, %87, %cst_58 {dimension_numbers = #tpu.dot_dimension_numbers<[1], [0], [0], [1], [0, 0, 1, 1], [], []>} : vector<128x128xbf16>, vector<128x128xbf16>, vector<128x128xf32> -> vector<128x128xf32>
    %89 = arith.addf %83, %88 : vector<128x128xf32>
    %c1_59 = arith.constant 1 : index
    %c0_60 = arith.constant 0 : index
    %c0_61 = arith.constant 0 : index
    %90 = vector.load %arg9[%c1_59, %c0_60, %c0_61] : memref<4x160x128xbf16, #tpu.memory_space<vmem>>, vector<1x128x128xbf16>
    %91 = vector.shape_cast %90 : vector<1x128x128xbf16> to vector<128x128xbf16>
    %c1_62 = arith.constant 1 : index
    %c0_63 = arith.constant 0 : index
    %c0_64 = arith.constant 0 : index
    %92 = vector.load %arg6[%c1_62, %c0_63, %c0_64] : memref<9x128x128xbf16, #tpu.memory_space<vmem>>, vector<1x128x128xbf16>
    %93 = vector.shape_cast %92 : vector<1x128x128xbf16> to vector<128x128xbf16>
    %cst_65 = arith.constant dense<0.000000e+00> : vector<128x128xf32>
    %94 = tpu.matmul %91, %93, %cst_65 {dimension_numbers = #tpu.dot_dimension_numbers<[1], [0], [0], [1], [0, 0, 1, 1], [], []>} : vector<128x128xbf16>, vector<128x128xbf16>, vector<128x128xf32> -> vector<128x128xf32>
    %95 = arith.addf %89, %94 : vector<128x128xf32>
    %c0_66 = arith.constant 0 : index
    %c1_67 = arith.constant 1 : index
    %c0_68 = arith.constant 0 : index
    %96 = vector.load %arg9[%c0_66, %c1_67, %c0_68] : memref<4x160x128xbf16, #tpu.memory_space<vmem>>, vector<1x128x128xbf16>
    %97 = vector.shape_cast %96 : vector<1x128x128xbf16> to vector<128x128xbf16>
    %c2_69 = arith.constant 2 : index
    %c0_70 = arith.constant 0 : index
    %c0_71 = arith.constant 0 : index
    %98 = vector.load %arg6[%c2_69, %c0_70, %c0_71] : memref<9x128x128xbf16, #tpu.memory_space<vmem>>, vector<1x128x128xbf16>
    %99 = vector.shape_cast %98 : vector<1x128x128xbf16> to vector<128x128xbf16>
    %cst_72 = arith.constant dense<0.000000e+00> : vector<128x128xf32>
    %100 = tpu.matmul %97, %99, %cst_72 {dimension_numbers = #tpu.dot_dimension_numbers<[1], [0], [0], [1], [0, 0, 1, 1], [], []>} : vector<128x128xbf16>, vector<128x128xbf16>, vector<128x128xf32> -> vector<128x128xf32>
    %101 = arith.addf %95, %100 : vector<128x128xf32>
    %c2_73 = arith.constant 2 : index
    %c0_74 = arith.constant 0 : index
    %c0_75 = arith.constant 0 : index
    %102 = vector.load %arg9[%c2_73, %c0_74, %c0_75] : memref<4x160x128xbf16, #tpu.memory_space<vmem>>, vector<1x128x128xbf16>
    %103 = vector.shape_cast %102 : vector<1x128x128xbf16> to vector<128x128xbf16>
    %c3_76 = arith.constant 3 : index
    %c0_77 = arith.constant 0 : index
    %c0_78 = arith.constant 0 : index
    %104 = vector.load %arg6[%c3_76, %c0_77, %c0_78] : memref<9x128x128xbf16, #tpu.memory_space<vmem>>, vector<1x128x128xbf16>
    %105 = vector.shape_cast %104 : vector<1x128x128xbf16> to vector<128x128xbf16>
    %cst_79 = arith.constant dense<0.000000e+00> : vector<128x128xf32>
    %106 = tpu.matmul %103, %105, %cst_79 {dimension_numbers = #tpu.dot_dimension_numbers<[1], [0], [0], [1], [0, 0, 1, 1], [], []>} : vector<128x128xbf16>, vector<128x128xbf16>, vector<128x128xf32> -> vector<128x128xf32>
    %107 = arith.addf %101, %106 : vector<128x128xf32>
    %c3_80 = arith.constant 3 : index
    %c0_81 = arith.constant 0 : index
    %c0_82 = arith.constant 0 : index
    %108 = vector.load %arg9[%c3_80, %c0_81, %c0_82] : memref<4x160x128xbf16, #tpu.memory_space<vmem>>, vector<1x128x128xbf16>
    %109 = vector.shape_cast %108 : vector<1x128x128xbf16> to vector<128x128xbf16>
    %c4 = arith.constant 4 : index
    %c0_83 = arith.constant 0 : index
    %c0_84 = arith.constant 0 : index
    %110 = vector.load %arg6[%c4, %c0_83, %c0_84] : memref<9x128x128xbf16, #tpu.memory_space<vmem>>, vector<1x128x128xbf16>
    %111 = vector.shape_cast %110 : vector<1x128x128xbf16> to vector<128x128xbf16>
    %cst_85 = arith.constant dense<0.000000e+00> : vector<128x128xf32>
    %112 = tpu.matmul %109, %111, %cst_85 {dimension_numbers = #tpu.dot_dimension_numbers<[1], [0], [0], [1], [0, 0, 1, 1], [], []>} : vector<128x128xbf16>, vector<128x128xbf16>, vector<128x128xf32> -> vector<128x128xf32>
    %113 = arith.addf %107, %112 : vector<128x128xf32>
    %c2_86 = arith.constant 2 : index
    %c1_87 = arith.constant 1 : index
    %c0_88 = arith.constant 0 : index
    %114 = vector.load %arg9[%c2_86, %c1_87, %c0_88] : memref<4x160x128xbf16, #tpu.memory_space<vmem>>, vector<1x128x128xbf16>
    %115 = vector.shape_cast %114 : vector<1x128x128xbf16> to vector<128x128xbf16>
    %c5 = arith.constant 5 : index
    %c0_89 = arith.constant 0 : index
    %c0_90 = arith.constant 0 : index
    %116 = vector.load %arg6[%c5, %c0_89, %c0_90] : memref<9x128x128xbf16, #tpu.memory_space<vmem>>, vector<1x128x128xbf16>
    %117 = vector.shape_cast %116 : vector<1x128x128xbf16> to vector<128x128xbf16>
    %cst_91 = arith.constant dense<0.000000e+00> : vector<128x128xf32>
    %118 = tpu.matmul %115, %117, %cst_91 {dimension_numbers = #tpu.dot_dimension_numbers<[1], [0], [0], [1], [0, 0, 1, 1], [], []>} : vector<128x128xbf16>, vector<128x128xbf16>, vector<128x128xf32> -> vector<128x128xf32>
    %119 = arith.addf %113, %118 : vector<128x128xf32>
    %c0_92 = arith.constant 0 : index
    %c16 = arith.constant 16 : index
    %c0_93 = arith.constant 0 : index
    %120 = vector.load %arg9[%c0_92, %c16, %c0_93] : memref<4x160x128xbf16, #tpu.memory_space<vmem>>, vector<1x128x128xbf16>
    %121 = vector.shape_cast %120 : vector<1x128x128xbf16> to vector<128x128xbf16>
    %c6 = arith.constant 6 : index
    %c0_94 = arith.constant 0 : index
    %c0_95 = arith.constant 0 : index
    %122 = vector.load %arg6[%c6, %c0_94, %c0_95] : memref<9x128x128xbf16, #tpu.memory_space<vmem>>, vector<1x128x128xbf16>
    %123 = vector.shape_cast %122 : vector<1x128x128xbf16> to vector<128x128xbf16>
    %cst_96 = arith.constant dense<0.000000e+00> : vector<128x128xf32>
    %124 = tpu.matmul %121, %123, %cst_96 {dimension_numbers = #tpu.dot_dimension_numbers<[1], [0], [0], [1], [0, 0, 1, 1], [], []>} : vector<128x128xbf16>, vector<128x128xbf16>, vector<128x128xf32> -> vector<128x128xf32>
    %125 = arith.addf %119, %124 : vector<128x128xf32>
    %c1_97 = arith.constant 1 : index
    %c16_98 = arith.constant 16 : index
    %c0_99 = arith.constant 0 : index
    %126 = vector.load %arg9[%c1_97, %c16_98, %c0_99] : memref<4x160x128xbf16, #tpu.memory_space<vmem>>, vector<1x128x128xbf16>
    %127 = vector.shape_cast %126 : vector<1x128x128xbf16> to vector<128x128xbf16>
    %c7 = arith.constant 7 : index
    %c0_100 = arith.constant 0 : index
    %c0_101 = arith.constant 0 : index
    %128 = vector.load %arg6[%c7, %c0_100, %c0_101] : memref<9x128x128xbf16, #tpu.memory_space<vmem>>, vector<1x128x128xbf16>
    %129 = vector.shape_cast %128 : vector<1x128x128xbf16> to vector<128x128xbf16>
    %cst_102 = arith.constant dense<0.000000e+00> : vector<128x128xf32>
    %130 = tpu.matmul %127, %129, %cst_102 {dimension_numbers = #tpu.dot_dimension_numbers<[1], [0], [0], [1], [0, 0, 1, 1], [], []>} : vector<128x128xbf16>, vector<128x128xbf16>, vector<128x128xf32> -> vector<128x128xf32>
    %131 = arith.addf %125, %130 : vector<128x128xf32>
    %c0_103 = arith.constant 0 : index
    %c17 = arith.constant 17 : index
    %c0_104 = arith.constant 0 : index
    %132 = vector.load %arg9[%c0_103, %c17, %c0_104] : memref<4x160x128xbf16, #tpu.memory_space<vmem>>, vector<1x128x128xbf16>
    %133 = vector.shape_cast %132 : vector<1x128x128xbf16> to vector<128x128xbf16>
    %c8 = arith.constant 8 : index
    %c0_105 = arith.constant 0 : index
    %c0_106 = arith.constant 0 : index
    %134 = vector.load %arg6[%c8, %c0_105, %c0_106] : memref<9x128x128xbf16, #tpu.memory_space<vmem>>, vector<1x128x128xbf16>
    %135 = vector.shape_cast %134 : vector<1x128x128xbf16> to vector<128x128xbf16>
    %cst_107 = arith.constant dense<0.000000e+00> : vector<128x128xf32>
    %136 = tpu.matmul %133, %135, %cst_107 {dimension_numbers = #tpu.dot_dimension_numbers<[1], [0], [0], [1], [0, 0, 1, 1], [], []>} : vector<128x128xbf16>, vector<128x128xbf16>, vector<128x128xf32> -> vector<128x128xf32>
    %137 = arith.addf %131, %136 : vector<128x128xf32>
    %c0_108 = arith.constant 0 : index
    %c0_109 = arith.constant 0 : index
    %138 = vector.load %arg7[%c0_108, %c0_109] : memref<1x128xf32, #tpu.memory_space<vmem>>, vector<1x128xf32>
    %139 = vector.broadcast %138 : vector<1x128xf32> to vector<128x128xf32>
    %140 = arith.addf %137, %139 : vector<128x128xf32>
    %cst_110 = arith.constant 0.000000e+00 : f32
    %141 = vector.broadcast %cst_110 : f32 to vector<128x128xf32>
    %142 = arith.maximumf %140, %141 : vector<128x128xf32>
    %143 = arith.truncf %142 : vector<128x128xf32> to vector<128x128xbf16>
    %144 = vector.shape_cast %143 : vector<128x128xbf16> to vector<8x16x128xbf16>
    %145 = vector.extract_strided_slice %144 {offsets = [0, 0, 0], sizes = [8, 8, 128], strides = [1, 1, 1]} : vector<8x16x128xbf16> to vector<8x8x128xbf16>
    %c0_111 = arith.constant 0 : index
    %c0_112 = arith.constant 0 : index
    %c0_113 = arith.constant 0 : index
    %c0_114 = arith.constant 0 : index
    %146 = vector.load %arg8[%c0_111, %c0_112, %c0_113, %c0_114] : memref<1x8x8x128xbf16, #tpu.memory_space<vmem>>, vector<1x8x8x128xbf16>
    %147 = vector.shape_cast %146 : vector<1x8x8x128xbf16> to vector<8x8x128xbf16>
    %148 = vector.shape_cast %145 : vector<8x8x128xbf16> to vector<1x8x8x128xbf16>
    tpu.vector_store %arg8[%c0_111, %c0_112, %c0_113, %c0_114], %148 {strides = array<i32>} : memref<1x8x8x128xbf16, #tpu.memory_space<vmem>>, vector<1x8x8x128xbf16>,
    return
  }
  func.func @transform_0(%arg0: i32, %arg1: i32) -> (i32, i32, i32, i32) {
    %c0_i32 = arith.constant 0 : i32
    %c0_i32_0 = arith.constant 0 : i32
    %c0_i32_1 = arith.constant 0 : i32
    %c0_i32_2 = arith.constant 0 : i32
    return %arg0, %c0_i32, %c0_i32_0, %c0_i32_1 : i32, i32, i32, i32
  }
  func.func @transform_1(%arg0: i32, %arg1: i32) -> (i32, i32, i32) {
    %c0_i32 = arith.constant 0 : i32
    %c0_i32_0 = arith.constant 0 : i32
    %c0_i32_1 = arith.constant 0 : i32
    %c0_i32_2 = arith.constant 0 : i32
    return %c0_i32, %c0_i32_0, %c0_i32_1 : i32, i32, i32
  }
  func.func @transform_2(%arg0: i32, %arg1: i32) -> (i32, i32) {
    %c0_i32 = arith.constant 0 : i32
    %c0_i32_0 = arith.constant 0 : i32
    %c0_i32_1 = arith.constant 0 : i32
    return %c0_i32, %c0_i32_0 : i32, i32
  }
  func.func @transform_3(%arg0: i32, %arg1: i32) -> (i32, i32) {
    %c0_i32 = arith.constant 0 : i32
    %c0_i32_0 = arith.constant 0 : i32
    %c0_i32_1 = arith.constant 0 : i32
    return %c0_i32, %c0_i32_0 : i32, i32
  }
  func.func @transform_4(%arg0: i32, %arg1: i32) -> (i32, i32, i32) {
    %c0_i32 = arith.constant 0 : i32
    %c0_i32_0 = arith.constant 0 : i32
    %c0_i32_1 = arith.constant 0 : i32
    %c0_i32_2 = arith.constant 0 : i32
    return %c0_i32, %c0_i32_0, %c0_i32_1 : i32, i32, i32
  }
  func.func @transform_5(%arg0: i32, %arg1: i32) -> (i32, i32) {
    %c0_i32 = arith.constant 0 : i32
    %c0_i32_0 = arith.constant 0 : i32
    %c0_i32_1 = arith.constant 0 : i32
    return %c0_i32, %c0_i32_0 : i32, i32
  }
  func.func @transform_6(%arg0: i32, %arg1: i32) -> (i32, i32, i32, i32) {
    %c0_i32 = arith.constant 0 : i32
    %c0_i32_0 = arith.constant 0 : i32
    %c0_i32_1 = arith.constant 0 : i32
    return %arg0, %arg1, %c0_i32, %c0_i32_0 : i32, i32, i32, i32
  }
}

</mosaic_0001>

<bundles_post_ra>
// kernel: tpu_custom_call.1
= control target key start
LH: loop header
LB: loop body
LE: loop exit
PB: predicated region body
PF: predicated region fallthrough
CT: control target
= control target key end

     0   :  { %11 = vsyncpa [#allocation4], 0  ;;  %s6122_s0 = inlined_call_operand.vmem [shape: bf16[8,9,16,16], index: 0, kind: input, shape index: {}]   ;;  %s6123_s1 = inlined_call_operand.vmem [shape: f32[4,144,1], index: 1, kind: input, shape index: {}]   ;;  %s6124_s2 = inlined_call_operand.vmem [shape: bf16[16,128], index: 2, kind: input, shape index: {}]   ;;  %s6125_s3 = inlined_call_operand.vmem [shape: f32[1,128], index: 3, kind: input, shape index: {}]   ;;  %s6126_s4 = inlined_call_operand.hbm [shape: bf16[9,128,128], index: 4, kind: input, shape index: {}]   ;;  %s6127_s5 = inlined_call_operand.vmem [shape: f32[1,128], index: 5, kind: input, shape index: {}]   ;;  %s6128_s6 = inlined_call_operand.hbm [shape: bf16[2,8,8,128], index: 6, kind: output, shape index: {}]  }
   0x1   :  { %12 = vsyncpa [#allocation5], 0 }
   0x2   :  { %14 = vsyncpa [#allocation5 + $0x1], 0  ;;  %s5123_s21 = smov 0   ;;  %s5125_s22 = smov 0  }
   0x3   :  { %s5127_s23 = smov 0   ;;  %s5129_s24 = smov 0  }
   0x4   :  { %s5131_s25 = smov 0   ;;  %s5133_s26 = smov 0  }
   0x5 LB: > { %s3846_s27 = sadd.s32 4294967295, %s5077_s26   ;;  %s3847_s28 = sadd.s32 4294967294, %s5077_s26   ;;  %s5077_s26 = sphi %s5133_s26, %s20_s26   ;;  %s5073_s25 = sphi %s5131_s25, %s6160_s25   ;;  %s5069_s24 = sphi %s5129_s24, %s6159_s24   ;;  %s5065_s23 = sphi %s5127_s23, %s6158_s23   ;;  %s5061_s22 = sphi %s5125_s22, %s6157_s22   ;;  %s5057_s21 = sphi %s5123_s21, %s6156_s21  }
   0x6   : > { %s32_s29 = sadd.s32 1, %s5073_s25  ;;  %s172_s30 = sadd.s32 1, %s5065_s23 }
   0x7   : > { %p34_p0 = scmp.ge.s32.totalorder %s32_s29, 2  ;;  %p182_p1 = scmp.ne.s32.totalorder %s5065_s23, %s5061_s22 }
   0x8   : > { %p183_p2 = scmp.eq.s32.totalorder %s3846_s27, 1  ;;  %p188_p3 = scmp.ne.s32.totalorder %s5061_s22, %s5057_s21 }
   0x9   : > { %s6162_s29 = smov (%p34_p0, %s32_s29), 0  ;;  %p189_p5 = scmp.eq.s32.totalorder %s3847_s28, 1 }
   0xa   : > { %p5163_p4 = por %p183_p2, %p182_p1  ;;  %s167_s8 = ssub.s32 %s5073_s25, %s6162_s29 }
   0xb   : > { %p3848_p6 = scmp.ge.s32.totalorder %s5077_s26, 1  ;;  %p170_p7 = scmp.eq.s32.totalorder %s167_s8, 0 }
   0xc   : > { %s6133_s7 = scalar_select %p5163_p4, 1, 0 }
   0xd   : > { %p5170_p8 = por %p189_p5, %p188_p3  ;;  %p196_p9 = scmp.lt.s32.totalorder %s5077_s26, 3 }
   0xe   : > { %s5176_s10 = scalar_select %p170_p7, %s5065_s23, %s172_s30  }
   0xf   : > { %s6134_s9 = scalar_select %p5170_p8, 1, 0 }
  0x10   : > { %p5178_p10 = pnand %p3848_p6, %p196_p9  ;;  %p5182_p11 = scmp.eq.s32.totalorder %s3846_s27, 0 }
  0x11   : > { %s5079_s13 = smov [#allocation3]   ;;  %s4967_s18 = scalar_lea.hbm %s6126_s4, 9216 }
  0x12   : > { %s6135_s11 = scalar_select %p5178_p10, 1, 0 }
  0x13   : > { %s6136_s12 = scalar_select %p5182_p11, 1, 0 }
  0x14   : > { %p4779_p12 = pneg %p5178_p10  ;;  %s217_s14 = sshll.u32 %s5079_s13, 4  ;;  %s218_s14 = int_to_ptr.vmem [resolvable:$true] %s217_s14 }
  0x15   : > { %p4968_p0 = scmp.ne.s32.totalorder %s6126_s4, %s4967_s18  ;;  %p4974_p5 = scmp.lt.u32.totalorder %s4967_s18, %s6126_s4 }
  0x16   : > { %p5190_p13 = pnand %p5182_p11, %p4779_p12 }
  0x18   : > { %p4969_p1 = pneg %p5190_p13 }
  0x1a   : > { %p4970_p2 = pnand %p4969_p1, %p4968_p0 }
  0x1c   : > { %p4971_p3 = pneg %p4970_p2 }
  0x1e   : > { %p4976_p6 = pnand %p4974_p5, %p4971_p3 }
  0x20   : > { %4979 = shalt.err (!%p4976_p6)
}
  0x21   : > { %s4980_s30 = scalar_lea.vmem %s218_s14, 9216  ;;  %p4988_p8 = scmp.lt.s32.totalorder %s218_s14, %s218_s14 }
  0x22   : > { %p4981_p7 = scmp.ne.s32.totalorder %s218_s14, %s4980_s30  ;;  %p4989_p4 = scmp.lt.s32.totalorder %s4980_s30, %s4980_s30 }
  0x24   : > { %p4983_p9 = pnand %p4981_p7, %p4969_p1  ;;  %p4990_p11 = por %p4989_p4, %p4988_p8 }
  0x26   : > { %p4984_p12 = pneg %p4983_p9 }
  0x28   : > { %p4991_p10 = pnand %p4990_p11, %p4984_p12 }
  0x2a   : > { %4994 = shalt.err (!%p4991_p10)
}
  0x2b   : > { %s5080_s8 = smov 64   ;;  %s5081_s13 = smov 4  }
  0x2c   : > { %4782 = dma.hbm_to_vmem [thread:$0]  (!%p5190_p13), %s6126_s4, 9216, %s218_s14, [#allocation4], %s5080_s8, %s5080_s8, %s5081_s13  }
  0x2d   : > { %p6138_p0 = scmp.ne.s32.totalorder %s6135_s11, 0 }
  0x2f   : > { %246 = sbr.rel (%p6138_p0) target bundleno = 733 (0x2dd), region = 44 }
  0x36   : > { %p6139_p2 = scmp.ne.s32.totalorder %s6136_s12, 0 }
  0x38   : > { %5048 = dma.done.wait (%p6139_p2), [#allocation4], 9216  }
  0x39   : > { %5050 = vsyncadd (%p6139_p2), [#allocation4], 4294958080  ;;  %s3854_s18 = sshll.u32 %s5069_s24, 2  ;;  %v5082_v0 = vmov 0   ;;  %v5083_v1 = vmov 0.0   ;;  %vm5084_vm0 = vmmov 0  }
  0x3a   : > { %4847 = vset.pattern.permute.xlu1 %v5082_v0  ;;  %4846 = vset.pattern.permute.xlu0 %v5082_v0  ;;  %p278_p4 = scmp.lt.s32.totalorder %s3854_s18, 7  ;;  %v3896_v2 = vld [vmem:[%s6123_s1 + $0xa0] sm:$0xff]  ;;  %v3894_v3 = vld [vmem:[%s6123_s1 + $0x90] sm:$0xff]  ;;  %v3897_v5 = vld [vmem:[%s6123_s1 + $0xa8] sm:$0xff]  ;;  %vm388_vm1 = vcmask 130048   ;;  %s274_s19 = sand.u32 1, %s5061_s22  }
  0x3b   : > { %4330 = vmatprep.subr.bf16.mxu0 %v5083_v1  ;;  %4770 = vmatprep.subr.bf16.mxu1 %v5083_v1  ;;  %v4848_v4 = vld [vmem:[%s6124_s2] sm:$0xff]   ;;  %v3895_v6 = vld [vmem:[%s6123_s1 + $0x98] sm:$0xff]  ;;  %v3898_v11 = vld [vmem:[%s6123_s1 + $0xb0] sm:$0xff]  ;;  %vm2164_vm2 = vsmask.f32 7424  ;;  %s3853_s20 = sshll.u32 %s274_s19, 5 }
  0x3c   : > { %4332 = vmatprep.mubr.msk.bf16.mxu0 %vm5084_vm0, %v5083_v1  ;;  %4360 = vmatprep.mubr.msk.bf16.mxu1 %vm5084_vm0, %v5083_v1  ;;  %s6164_s18 = smov (!%p278_p4, %s3854_s18), 7  ;;  %v4851_v9 = vld [vmem:[%s6124_s2] sm:$0xff]   ;;  %v3899_v10 = vld [vmem:[%s6123_s1 + $0xb8] sm:$0xff]  ;;  %v3901_v12 = vld [vmem:[%s6123_s1 + $0xc8] sm:$0xff]  ;;  %s6059_s27 = scalar_lea.vmem [#allocation6], %s3853_s20 }
  0x3d   : > { %s4772_s11 = smul.u32 72, %s6164_s18  ;;  %928 = vperm.xlu1 %4847, %v3896_v2   ;;  %918 = vperm.xlu0 %4846, %v3894_v3   ;;  %v3900_v13 = vld [vmem:[%s6123_s1 + $0xc0] sm:$0xff]  ;;  %v3903_v16 = vld [vmem:[%s6123_s1 + $0xd8] sm:$0xff]  ;;  %v3902_v17 = vld [vmem:[%s6123_s1 + $0xd0] sm:$0xff]  ;;  %s3736_s30 = sshll.u32 %s6059_s27, 4  ;;  %s6066_s30 = int_to_ptr.vmem [resolvable:$true] %s3736_s30 }
  0x3e   : > { %4331 = vmatpush3.bf16.msra.mxu0 %v4848_v4  ;;  %4771 = vmatpush3.bf16.msra.mxu1 %v4848_v4  ;;  %v3905_v18 = vld [vmem:[%s6123_s1 + $0xe8] sm:$0xff]  ;;  %v3904_v19 = vld [vmem:[%s6123_s1 + $0xe0] sm:$0xff]  ;;  %v3907_v24 = vld [vmem:[%s6123_s1 + $0xf8] sm:$0xff]  ;;  %s4122_s8 = sshll.u32 %s5069_s24, 9  ;;  %s4995_s18 = scalar_lea.vmem %s6066_s30, 512 }
  0x3f   : > { %s5232_s28 = scalar_lea.vmem %s6122_s0, %s4772_s11  ;;  %4368 = vmatprep.subr.bf16.mxu1 %v5083_v1  ;;  %4406 = vmatprep.subr.bf16.mxu0 %v5083_v1  ;;  %v4859_v22 = vld [vmem:[%s6124_s2] sm:$0xff]   ;;  %v3906_v25 = vld [vmem:[%s6123_s1 + $0xf0] sm:$0xff]  ;;  %v311_v26 = vld [vmem:[%s6123_s1 + $0x8] sm:$0xff]  ;;  %s6071_s17 = scalar_lea.hbm %s6128_s6, %s4122_s8 }
  0x40   : > { %v4849_v7 = vld [vmem:[%s5232_s28] sm:$0xff]   ;;  %v4850_v8 = vld [vmem:[%s5232_s28 + $0x38] sm:$0xff]   ;;  %v4852_v14 = vld [vmem:[%s5232_s28 + $0x8] sm:$0xff]   ;;  %p4996_p8 = scmp.ne.s32.totalorder %s6066_s30, %s4995_s18  ;;  %p6154_p10 = scmp.ne.s32.totalorder %s6133_s7, 0 }
  0x41   : > { %933 = vperm.xlu1 %4847, %v3897_v5   ;;  %923 = vperm.xlu0 %4846, %v3895_v6   ;;  %v4853_v15 = vld [vmem:[%s5232_s28 + $0x40] sm:$0xff]   ;;  %v4854_v20 = vld [vmem:[%s5232_s28 + $0x10] sm:$0xff]   ;;  %v4855_v21 = vld [vmem:[%s5232_s28 + $0x48] sm:$0xff]   ;;  %s5085_s24 = smov [#allocation6]  }
  0x42   : > { %4333 = vmatmul.mubr.msk.bf16.vlgmr.msra.gmra.mrb[0].mxu0 %vm388_vm1, %v4849_v7  ;;  %4361 = vmatmul.mubr.msk.bf16.vlgmr.msra.gmra.mrb[0].mxu1 %vm388_vm1, %v4850_v8  ;;  %v4856_v23 = vld [vmem:[%s6124_s2] sm:$0xff]   ;;  %v4857_v28 = vld [vmem:[%s5232_s28 + $0x18] sm:$0xff]   ;;  %v4858_v29 = vld [vmem:[%s5232_s28 + $0x50] sm:$0xff]   ;;  %p4997_p11 = pnand %p4996_p8, %p6154_p10  ;;  %s4999_s11 = sshll.u32 %s5085_s24, 4  ;;  %s5000_s11 = int_to_ptr.vmem [resolvable:$false] %s4999_s11 }
  0x43   : > { %4369 = vmatpush3.bf16.msra.mxu1 %v4851_v9  ;;  %4336 = vmatprep.mubr.msk.bf16.mxu0 %vm5084_vm0, %v5083_v1  ;;  %v310_v27 = vld [vmem:[%s6123_s1] sm:$0xff]  ;;  %v3909_v30 = vld [vmem:[%s6123_s1 + $0x108] sm:$0xff]  ;;  %v313_v32 = vld [vmem:[%s6123_s1 + $0x18] sm:$0xff]  ;;  %s5001_s12 = scalar_lea.vmem %s5000_s11, 1024  ;;  %p5002_p1 = scmp.lt.s32.totalorder %s6066_s30, %s5000_s11 }
  0x44   : > { %4364 = vmatprep.mubr.msk.bf16.mxu1 %vm5084_vm0, %v5083_v1  ;;  %4444 = vmatprep.subr.bf16.mxu1 %v5083_v1  ;;  %v3908_v31 = vld [vmem:[%s6123_s1 + $0x100] sm:$0xff]  ;;  %v312_v33 = vld [vmem:[%s6123_s1 + $0x10] sm:$0xff]  ;;  %v4861_v35 = vld [vmem:[%s5232_s28 + $0x58] sm:$0xff]   ;;  %p4998_p13 = pneg %p4997_p11  ;;  %p5003_p3 = scmp.lt.s32.totalorder %s5001_s12, %s4995_s18 }
  0x45   : > { %943 = vperm.xlu1 %4847, %v3899_v10   ;;  %938 = vperm.xlu0 %4846, %v3898_v11   ;;  %v4860_v34 = vld [vmem:[%s5232_s28 + $0x20] sm:$0xff]   ;;  %v315_v36 = vld [vmem:[%s6123_s1 + $0x28] sm:$0xff]  ;;  %v317_v38 = vld [vmem:[%s6123_s1 + $0x38] sm:$0xff] }
  0x46   : > { %4407 = vmatpush3.bf16.msra.mxu0 %v4859_v22  ;;  %v314_v37 = vld [vmem:[%s6123_s1 + $0x20] sm:$0xff]  ;;  %v316_v39 = vld [vmem:[%s6123_s1 + $0x30] sm:$0xff]  ;;  %v4862_v40 = vld [vmem:[%s5232_s28 + $0x28] sm:$0xff]   ;;  %p5004_p5 = por %p5003_p3, %p5002_p1 }
  0x47   : > { %v4863_v41 = vld [vmem:[%s5232_s28 + $0x60] sm:$0xff]   ;;  %v319_v42 = vld [vmem:[%s6123_s1 + $0x48] sm:$0xff]  ;;  %v321_v44 = vld [vmem:[%s6123_s1 + $0x58] sm:$0xff] }
  0x48   : > { %v318_v43 = vld [vmem:[%s6123_s1 + $0x40] sm:$0xff]  ;;  %v320_v45 = vld [vmem:[%s6123_s1 + $0x50] sm:$0xff]  ;;  %v4865_v47 = vld [vmem:[%s5232_s28 + $0x68] sm:$0xff]   ;;  %p5005_p6 = pnand %p5004_p5, %p4998_p13 }
  0x49   : > { %953 = vperm.xlu1 %4847, %v3901_v12   ;;  %948 = vperm.xlu0 %4846, %v3900_v13   ;;  %v4864_v46 = vld [vmem:[%s5232_s28 + $0x30] sm:$0xff]   ;;  %v323_v48 = vld [vmem:[%s6123_s1 + $0x68] sm:$0xff]  ;;  %v322_v49 = vld [vmem:[%s6123_s1 + $0x60] sm:$0xff] }
  0x4a   : > { %4337 = vmatmul.mubr.msk.bf16.gmra.mrb[4].mxu0 %vm388_vm1, %v4852_v14  ;;  %4365 = vmatmul.mubr.msk.bf16.gmra.mrb[4].mxu1 %vm388_vm1, %v4853_v15  ;;  %v325_v50 = vld [vmem:[%s6123_s1 + $0x78] sm:$0xff]  ;;  %v324_v51 = vld [vmem:[%s6123_s1 + $0x70] sm:$0xff]  ;;  %v327_v54 = vld [vmem:[%s6123_s1 + $0x88] sm:$0xff] }
  0x4b   : > { %4340 = vmatprep.mubr.msk.bf16.mxu0 %vm5084_vm0, %v5083_v1  ;;  %4370 = vmatprep.mubr.msk.bf16.mxu1 %vm5084_vm0, %v5083_v1  ;;  %v4866_v52 = vld [vmem:[%s5232_s28 + $0x70] sm:$0xff]   ;;  %v326_v55 = vld [vmem:[%s6123_s1 + $0x80] sm:$0xff]  ;;  %v3951_v56 = vld [vmem:[%s6123_s1 + $0x128] sm:$0xff] }
  0x4c   : > { %v4867_v53 = vld [vmem:[%s5232_s28 + $0x90] sm:$0xff]   ;;  %v3950_v57 = vld [vmem:[%s6123_s1 + $0x120] sm:$0xff]  ;;  %v4868_v58 = vld [vmem:[%s5232_s28 + $0x78] sm:$0xff]  }
  0x4d   : > { %963 = vperm.xlu1 %4847, %v3903_v16   ;;  %958 = vperm.xlu0 %4846, %v3902_v17   ;;  %v4869_v59 = vld [vmem:[%s5232_s28 + $0x98] sm:$0xff]   ;;  %v3952_v61 = vld [vmem:[%s6123_s1 + $0x130] sm:$0xff]  ;;  %v4870_v0 = vld [vmem:[%s5232_s28 + $0x80] sm:$0xff]  }
  0x4e   : > { %v3953_v60 = vld [vmem:[%s6123_s1 + $0x138] sm:$0xff]  ;;  %v4006_v63 = vld [vmem:[%s6123_s1 + $0x1b0] sm:$0xff]  ;;  %v4871_v2 = vld [vmem:[%s5232_s28 + $0xa0] sm:$0xff]  }
  0x4f   : > { %v4007_v62 = vld [vmem:[%s6123_s1 + $0x1b8] sm:$0xff]  ;;  %v4009_v3 = vld [vmem:[%s6123_s1 + $0x1c8] sm:$0xff]  ;;  %v4008_v4 = vld [vmem:[%s6123_s1 + $0x1c0] sm:$0xff] }
  0x50   : > { %v4888_v5 = vld [vmem:[#allocation3] sm:$0xff]   ;;  %v3955_v6 = vld [vmem:[%s6123_s1 + $0x148] sm:$0xff]  ;;  %v3957_v10 = vld [vmem:[%s6123_s1 + $0x158] sm:$0xff] }
  0x51   : > { %973 = vperm.xlu1 %4847, %v3905_v18   ;;  %968 = vperm.xlu0 %4846, %v3904_v19   ;;  %v3954_v7 = vld [vmem:[%s6123_s1 + $0x140] sm:$0xff]  ;;  %v4872_v8 = vld [vmem:[%s5232_s28 + $0x88] sm:$0xff]   ;;  %v3956_v11 = vld [vmem:[%s6123_s1 + $0x150] sm:$0xff] }
  0x52   : > { %4341 = vmatmul.mubr.msk.bf16.gmra.mrb[8].mxu0 %vm388_vm1, %v4854_v20  ;;  %4371 = vmatmul.mubr.msk.bf16.vlgmr.msra.gmra.mrb[8].mxu1 %vm388_vm1, %v4855_v21  ;;  %v4873_v9 = vld [vmem:[%s5232_s28 + $0xa8] sm:$0xff]   ;;  %v4011_v12 = vld [vmem:[%s6123_s1 + $0x1d8] sm:$0xff]  ;;  %v4010_v13 = vld [vmem:[%s6123_s1 + $0x1d0] sm:$0xff] }
  0x53   : > { %4445 = vmatpush3.bf16.msra.mxu1 %v4856_v23  ;;  %4344 = vmatprep.mubr.msk.bf16.mxu0 %vm5084_vm0, %v5083_v1  ;;  %v4874_v14 = vld [vmem:[%s5232_s28 + $0xb0] sm:$0xff]   ;;  %v4875_v15 = vld [vmem:[%s5232_s28 + $0xd8] sm:$0xff]   ;;  %v4013_v16 = vld [vmem:[%s6123_s1 + $0x1e8] sm:$0xff] }
  0x54   : > { %4374 = vmatprep.mubr.msk.bf16.mxu1 %vm5084_vm0, %v5083_v1  ;;  %4514 = vmatprep.subr.bf16.mxu1 %v4888_v5  ;;  %v4012_v17 = vld [vmem:[%s6123_s1 + $0x1e0] sm:$0xff]  ;;  %v4890_v19 = vld [vmem:[#allocation3 + $0x8] sm:$0xff]   ;;  %v4876_v23 = vld [vmem:[%s5232_s28 + $0xb8] sm:$0xff]  }
  0x55   : > { %983 = vperm.xlu1 %4847, %v3907_v24   ;;  %978 = vperm.xlu0 %4846, %v3906_v25   ;;  %v4889_v18 = vld [vmem:[#allocation3 + $0x40] sm:$0xff]   ;;  %v4892_v20 = vld [vmem:[#allocation3 + $0x48] sm:$0xff]   ;;  %v4891_v25 = vld [vmem:[#allocation3 + $0x10] sm:$0xff]  }
  0x56   : > { %v3959_v21 = vld [vmem:[%s6123_s1 + $0x168] sm:$0xff]  ;;  %v3958_v22 = vld [vmem:[%s6123_s1 + $0x160] sm:$0xff]  ;;  %4482 = vmatprep.subr.bf16.mxu0 %v4889_v18 }
  0x57   : > { %v4877_v24 = vld [vmem:[%s5232_s28 + $0xe0] sm:$0xff]  }
  0x59   : > { %546 = vperm.xlu1 %4847, %v311_v26   ;;  %541 = vperm.xlu0 %4846, %v310_v27   ;;  %v3961_v26 = vld [vmem:[%s6123_s1 + $0x178] sm:$0xff]  ;;  %v3960_v27 = vld [vmem:[%s6123_s1 + $0x170] sm:$0xff] }
  0x5a   : > { %4345 = vmatmul.mubr.msk.bf16.gmra.mrb[12].mxu0 %vm388_vm1, %v4857_v28  ;;  %4375 = vmatmul.mubr.msk.bf16.gmra.mrb[12].mxu1 %vm388_vm1, %v4858_v29  ;;  %v4895_v28 = vld [vmem:[#allocation3 + $0x50] sm:$0xff]   ;;  %v4893_v29 = vld [vmem:[#allocation3 + $0x18] sm:$0xff]  }
  0x5b   : > { %4348 = vmatprep.mubr.msk.bf16.mxu0 %vm5084_vm0, %v5083_v1  ;;  %4378 = vmatprep.mubr.msk.bf16.mxu1 %vm5084_vm0, %v5083_v1 }
  0x5d   : > { %993 = vperm.xlu1 %4847, %v3909_v30   ;;  %988 = vperm.xlu0 %4846, %v3908_v31   ;;  %v4015_v30 = vld [vmem:[%s6123_s1 + $0x1f8] sm:$0xff]  ;;  %v4014_v31 = vld [vmem:[%s6123_s1 + $0x1f0] sm:$0xff] }
  0x61   : > { %556 = vperm.xlu1 %4847, %v313_v32   ;;  %551 = vperm.xlu0 %4846, %v312_v33   ;;  %v4878_v32 = vld [vmem:[%s5232_s28 + $0xc0] sm:$0xff]   ;;  %v4879_v33 = vld [vmem:[%s5232_s28 + $0xe8] sm:$0xff]  }
  0x62   : > { %4349 = vmatmul.mubr.msk.bf16.gmra.mrb[16].mxu0 %vm388_vm1, %v4860_v34  ;;  %4379 = vmatmul.mubr.msk.bf16.gmra.mrb[16].mxu1 %vm388_vm1, %v4861_v35  ;;  %v4017_v34 = vld [vmem:[%s6123_s1 + $0x208] sm:$0xff]  ;;  %v4016_v35 = vld [vmem:[%s6123_s1 + $0x200] sm:$0xff] }
  0x63   : > { %4352 = vmatprep.mubr.msk.bf16.mxu0 %vm5084_vm0, %v5083_v1  ;;  %4382 = vmatprep.mubr.msk.bf16.mxu1 %vm5084_vm0, %v5083_v1 }
  0x65   : > { %566 = vperm.xlu1 %4847, %v315_v36   ;;  %561 = vperm.xlu0 %4846, %v314_v37   ;;  %v4894_v36 = vld [vmem:[#allocation3 + $0x20] sm:$0xff]   ;;  %v4897_v37 = vld [vmem:[#allocation3 + $0x58] sm:$0xff]  }
  0x69   : > { %576 = vperm.xlu1 %4847, %v317_v38   ;;  %571 = vperm.xlu0 %4846, %v316_v39   ;;  %v4899_v38 = vld [vmem:[#allocation3 + $0x60] sm:$0xff]   ;;  %v3963_v39 = vld [vmem:[%s6123_s1 + $0x188] sm:$0xff] }
  0x6a   : > { %4353 = vmatmul.mubr.msk.bf16.gmra.mrb[20].mxu0 %vm388_vm1, %v4862_v40  ;;  %4383 = vmatmul.mubr.msk.bf16.gmra.mrb[20].mxu1 %vm388_vm1, %v4863_v41  ;;  %v3962_v40 = vld [vmem:[%s6123_s1 + $0x180] sm:$0xff]  ;;  %v4880_v41 = vld [vmem:[%s5232_s28 + $0xc8] sm:$0xff]  }
  0x6b   : > { %4356 = vmatprep.mubr.msk.bf16.mxu0 %vm5084_vm0, %v5083_v1  ;;  %4386 = vmatprep.mubr.msk.bf16.mxu1 %vm5084_vm0, %v5083_v1 }
  0x6d   : > { %586 = vperm.xlu1 %4847, %v319_v42   ;;  %581 = vperm.xlu0 %4846, %v318_v43   ;;  %v4881_v42 = vld [vmem:[%s5232_s28 + $0xf0] sm:$0xff]   ;;  %v4896_v43 = vld [vmem:[#allocation3 + $0x28] sm:$0xff]  }
  0x71   : > { %596 = vperm.xlu1 %4847, %v321_v44   ;;  %591 = vperm.xlu0 %4846, %v320_v45   ;;  %v3965_v44 = vld [vmem:[%s6123_s1 + $0x198] sm:$0xff]  ;;  %v3964_v45 = vld [vmem:[%s6123_s1 + $0x190] sm:$0xff] }
  0x72   : > { %4357 = vmatmul.mubr.msk.bf16.gmra.mrb[24].mxu0 %vm388_vm1, %v4864_v46  ;;  %4387 = vmatmul.mubr.msk.bf16.gmra.mrb[24].mxu1 %vm388_vm1, %v4865_v47  ;;  %v4901_v46 = vld [vmem:[#allocation3 + $0x68] sm:$0xff]   ;;  %v4898_v47 = vld [vmem:[#allocation3 + $0x30] sm:$0xff]  }
  0x73   : > { %4390 = vmatprep.mubr.msk.bf16.mxu1 %vm5084_vm0, %v5083_v1  ;;  %4408 = vmatprep.mubr.msk.bf16.mxu0 %vm5084_vm0, %v5083_v1 }
  0x75   : > { %606 = vperm.xlu1 %4847, %v323_v48   ;;  %601 = vperm.xlu0 %4846, %v322_v49   ;;  %v4019_v48 = vld [vmem:[%s6123_s1 + $0x218] sm:$0xff]  ;;  %v4018_v49 = vld [vmem:[%s6123_s1 + $0x210] sm:$0xff] }
  0x79   : > { %616 = vperm.xlu1 %4847, %v325_v50   ;;  %611 = vperm.xlu0 %4846, %v324_v51   ;;  %v4882_v50 = vld [vmem:[%s5232_s28 + $0xd0] sm:$0xff]   ;;  %v4883_v51 = vld [vmem:[%s5232_s28 + $0xf8] sm:$0xff]  }
  0x7a   : > { %4391 = vmatmul.mubr.msk.bf16.gmra.mrb[28].mxu1 %vm388_vm1, %v4866_v52  ;;  %4409 = vmatmul.mubr.msk.bf16.vlgmr.msra.gmra.mrb[28].mxu0 %vm388_vm1, %v4867_v53  ;;  %v4900_v52 = vld [vmem:[#allocation3 + $0x38] sm:$0xff]   ;;  %v4902_v53 = vld [vmem:[#allocation3 + $0x70] sm:$0xff]  }
  0x7b   : > { %4394 = vmatprep.mubr.msk.bf16.mxu1 %vm5084_vm0, %v5083_v1  ;;  %4412 = vmatprep.mubr.msk.bf16.mxu0 %vm5084_vm0, %v5083_v1 }
  0x7c   : > { %4483 = vmatpush3.bf16.msra.mxu0 %v4889_v18 }
  0x7d   : > { %626 = vperm.xlu1 %4847, %v327_v54   ;;  %621 = vperm.xlu0 %4846, %v326_v55   ;;  %v4021_v54 = vld [vmem:[%s6123_s1 + $0x228] sm:$0xff]  ;;  %v4020_v55 = vld [vmem:[%s6123_s1 + $0x220] sm:$0xff] }
  0x7e   : > { %4484 = vmatprep.subr.bf16.mxu0 %v4892_v20 }
  0x80   : > { %4485 = vmatpush3.bf16.msra.mxu0 %v4892_v20 }
  0x81   : > { %1301 = vperm.xlu1 %4847, %v3951_v56   ;;  %1296 = vperm.xlu0 %4846, %v3950_v57   ;;  %v4903_v56 = vld [vmem:[#allocation3 + $0x78] sm:$0xff]  }
  0x82   : > { %4395 = vmatmul.mubr.msk.bf16.gmra.mrb[32].mxu1 %vm388_vm1, %v4868_v58  ;;  %4413 = vmatmul.mubr.msk.bf16.gmra.mrb[32].mxu0 %vm388_vm1, %v4869_v59  ;;  %v3967_v59 = vld [vmem:[%s6123_s1 + $0x1a8] sm:$0xff] }
  0x83   : > { %4398 = vmatprep.mubr.msk.bf16.mxu1 %vm5084_vm0, %v5083_v1  ;;  %4416 = vmatprep.mubr.msk.bf16.mxu0 %vm5084_vm0, %v5083_v1 }
  0x84   : > { %4486 = vmatprep.subr.bf16.mxu0 %v4895_v28 }
  0x85   : > { %1311 = vperm.xlu1 %4847, %v3953_v60   ;;  %1306 = vperm.xlu0 %4846, %v3952_v61   ;;  %v3966_v60 = vld [vmem:[%s6123_s1 + $0x1a0] sm:$0xff] }
  0x86   : > { %4487 = vmatpush3.bf16.msra.mxu0 %v4895_v28  ;;  %v4884_v61 = vld [vmem:[%s5232_s28 + $0x100] sm:$0xff]  }
  0x87   : > { %4488 = vmatprep.subr.bf16.mxu0 %v4897_v37 }
  0x89   : > { %1679 = vperm.xlu1 %4847, %v4007_v62   ;;  %1674 = vperm.xlu0 %4846, %v4006_v63   ;;  %v5578_v62 = vld [vmem:[#allocation3 + $0xc0] sm:$0xff]  }
  0x8a   : > { %4399 = vmatmul.mubr.msk.bf16.gmra.mrb[36].mxu1 %vm388_vm1, %v4870_v0  ;;  %4417 = vmatmul.mubr.msk.bf16.gmra.mrb[36].mxu0 %vm388_vm1, %v4871_v2  ;;  %v3911_v2 = vld [vmem:[%s6123_s1 + $0x118] sm:$0xff] }
  0x8b   : > { %4402 = vmatprep.mubr.msk.bf16.mxu1 %vm5084_vm0, %v5083_v1  ;;  %4420 = vmatprep.mubr.msk.bf16.mxu0 %vm5084_vm0, %v5083_v1 }
  0x8c   : > { %4489 = vmatpush3.bf16.msra.mxu0 %v4897_v37 }
  0x8d   : > { %1689 = vperm.xlu1 %4847, %v4009_v3   ;;  %1684 = vperm.xlu0 %4846, %v4008_v4   ;;  %v3910_v3 = vld [vmem:[%s6123_s1 + $0x110] sm:$0xff] }
  0x8e   : > { %4490 = vmatprep.subr.bf16.mxu0 %v4899_v38 }
  0x90   : > { %4491 = vmatpush3.bf16.msra.mxu0 %v4899_v38 }
  0x91   : > { %1321 = vperm.xlu1 %4847, %v3955_v6   ;;  %1316 = vperm.xlu0 %4846, %v3954_v7   ;;  %v4023_v6 = vld [vmem:[%s6123_s1 + $0x238] sm:$0xff]  ;;  %v4022_v7 = vld [vmem:[%s6123_s1 + $0x230] sm:$0xff] }
  0x92   : > { %4403 = vmatmul.mubr.msk.bf16.gmra.mrb[40].mxu1 %vm388_vm1, %v4872_v8  ;;  %4421 = vmatmul.mubr.msk.bf16.gmra.mrb[40].mxu0 %vm388_vm1, %v4873_v9  ;;  %v4885_v8 = vld [vmem:[%s5232_s28 + $0x108] sm:$0xff]  }
  0x93   : > { %4424 = vmatprep.mubr.msk.bf16.mxu0 %vm5084_vm0, %v5083_v1  ;;  %4446 = vmatprep.mubr.msk.bf16.mxu1 %vm5084_vm0, %v5083_v1 }
  0x94   : > { %4492 = vmatprep.subr.bf16.mxu0 %v4901_v46 }
  0x95   : > { %1331 = vperm.xlu1 %4847, %v3957_v10   ;;  %1326 = vperm.xlu0 %4846, %v3956_v11  }
  0x96   : > { %4493 = vmatpush3.bf16.msra.mxu0 %v4901_v46 }
  0x97   : > { %4494 = vmatprep.subr.bf16.mxu0 %v4902_v53 }
  0x99   : > { %1699 = vperm.xlu1 %4847, %v4011_v12   ;;  %1694 = vperm.xlu0 %4846, %v4010_v13   ;;  %v4886_v13 = vld [vmem:[%s5232_s28 + $0x110] sm:$0xff]  }
  0x9a   : > { %4425 = vmatmul.mubr.msk.bf16.gmra.mrb[44].mxu0 %vm388_vm1, %v4874_v14  ;;  %4447 = vmatmul.mubr.msk.bf16.vlgmr.msra.gmra.mrb[44].mxu1 %vm388_vm1, %v4875_v15  ;;  %v5617_v14 = vld [vmem:[#allocation3 + $0x80] sm:$0xff]  }
  0x9b   : > { %4428 = vmatprep.mubr.msk.bf16.mxu0 %vm5084_vm0, %v5083_v1  ;;  %4450 = vmatprep.mubr.msk.bf16.mxu1 %vm5084_vm0, %v5083_v1 }
  0x9c   : > { %4515 = vmatpush3.bf16.msra.mxu1 %v4888_v5  ;;  %4495 = vmatpush3.bf16.msra.mxu0 %v4902_v53 }
  0x9d   : > { %1709 = vperm.xlu1 %4847, %v4013_v16   ;;  %1704 = vperm.xlu0 %4846, %v4012_v17  }
  0x9e   : > { %4516 = vmatprep.subr.bf16.mxu1 %v4890_v19  ;;  %4496 = vmatprep.subr.bf16.mxu0 %v4903_v56 }
  0xa0   : > { %4517 = vmatpush3.bf16.msra.mxu1 %v4890_v19  ;;  %4497 = vmatpush3.bf16.msra.mxu0 %v4903_v56  ;;  %v4887_v19 = vld [vmem:[%s5232_s28 + $0x118] sm:$0xff]   ;;  %s6076_s28 = scalar_lea.sflag [#allocation5], %s274_s19 }
  0xa1   : > { %1341 = vperm.xlu1 %4847, %v3959_v21   ;;  %1336 = vperm.xlu0 %4846, %v3958_v22  }
  0xa2   : > { %4429 = vmatmul.mubr.msk.bf16.gmra.mrb[48].mxu0 %vm388_vm1, %v4876_v23  ;;  %4451 = vmatmul.mubr.msk.bf16.gmra.mrb[48].mxu1 %vm388_vm1, %v4877_v24 }
  0xa3   : > { %4432 = vmatprep.mubr.msk.bf16.mxu0 %vm5084_vm0, %v5083_v1  ;;  %4454 = vmatprep.mubr.msk.bf16.mxu1 %vm5084_vm0, %v5083_v1 }
  0xa4   : > { %4518 = vmatprep.subr.bf16.mxu1 %v4891_v25  ;;  %4546 = vmatprep.subr.bf16.mxu0 %v5617_v14 }
  0xa5   : > { %1351 = vperm.xlu1 %4847, %v3961_v26   ;;  %1346 = vperm.xlu0 %4846, %v3960_v27  }
  0xa6   : > { %4519 = vmatpush3.bf16.msra.mxu1 %v4891_v25 }
  0xa7   : > { %4520 = vmatprep.subr.bf16.mxu1 %v4893_v29 }
  0xa9   : > { %1719 = vperm.xlu1 %4847, %v4015_v30   ;;  %1714 = vperm.xlu0 %4846, %v4014_v31  }
  0xaa   : > { %4433 = vmatmul.mubr.msk.bf16.gmra.mrb[52].mxu0 %vm388_vm1, %v4878_v32  ;;  %4455 = vmatmul.mubr.msk.bf16.gmra.mrb[52].mxu1 %vm388_vm1, %v4879_v33 }
  0xab   : > { %4436 = vmatprep.mubr.msk.bf16.mxu0 %vm5084_vm0, %v5083_v1  ;;  %4458 = vmatprep.mubr.msk.bf16.mxu1 %vm5084_vm0, %v5083_v1 }
  0xac   : > { %4521 = vmatpush3.bf16.msra.mxu1 %v4893_v29 }
  0xad   : > { %1729 = vperm.xlu1 %4847, %v4017_v34   ;;  %1724 = vperm.xlu0 %4846, %v4016_v35  }
  0xae   : > { %4522 = vmatprep.subr.bf16.mxu1 %v4894_v36 }
  0xb0   : > { %4523 = vmatpush3.bf16.msra.mxu1 %v4894_v36 }
  0xb1   : > { %1361 = vperm.xlu1 %4847, %v3963_v39   ;;  %1356 = vperm.xlu0 %4846, %v3962_v40  }
  0xb2   : > { %4437 = vmatmul.mubr.msk.bf16.gmra.mrb[56].mxu0 %vm388_vm1, %v4880_v41  ;;  %4459 = vmatmul.mubr.msk.bf16.gmra.mrb[56].mxu1 %vm388_vm1, %v4881_v42 }
  0xb3   : > { %4440 = vmatprep.mubr.msk.bf16.mxu0 %vm5084_vm0, %v5083_v1  ;;  %4462 = vmatprep.mubr.msk.bf16.mxu1 %vm5084_vm0, %v5083_v1 }
  0xb4   : > { %4524 = vmatprep.subr.bf16.mxu1 %v4896_v43 }
  0xb5   : > { %1371 = vperm.xlu1 %4847, %v3965_v44   ;;  %1366 = vperm.xlu0 %4846, %v3964_v45  }
  0xb6   : > { %4525 = vmatpush3.bf16.msra.mxu1 %v4896_v43 }
  0xb7   : > { %4526 = vmatprep.subr.bf16.mxu1 %v4898_v47 }
  0xb9   : > { %1739 = vperm.xlu1 %4847, %v4019_v48   ;;  %1734 = vperm.xlu0 %4846, %v4018_v49   ;;  %v5684_v49 = vld [vmem:[%s6125_s3] ss:$0 sm:$0xff] }
  0xba   : > { %4441 = vmatmul.mubr.msk.bf16.gmra.mrb[60].mxu0 %vm388_vm1, %v4882_v50  ;;  %4463 = vmatmul.mubr.msk.bf16.gmra.mrb[60].mxu1 %vm388_vm1, %v4883_v51 }
  0xbb   : > { %4466 = vmatprep.mubr.msk.bf16.mxu1 %vm5084_vm0, %v5083_v1  ;;  %4527 = vmatpush3.bf16.msra.mxu1 %v4898_v47 }
  0xbc   : > { %v5567_v57 = vpop.permute.xlu1 %928  ;;  %v5569_v58 = vpop.permute.xlu0 %918  ;;  %4528 = vmatprep.subr.bf16.mxu1 %v4900_v52 }
  0xbd   : > { %1749 = vperm.xlu1 %4847, %v4021_v54   ;;  %1744 = vperm.xlu0 %4846, %v4020_v55  }
  0xbf   : > { %4529 = vmatpush3.bf16.msra.mxu1 %v4900_v52 }
  0xc0   : > { %v5580_v63 = vpop.permute.xlu1 %933  ;;  %v5582_v0 = vpop.permute.xlu0 %923  ;;  %4578 = vmatprep.subr.bf16.mxu1 %v5578_v62 }
  0xc1   : > { %1381 = vperm.xlu1 %4847, %v3967_v59   ;;  %1376 = vperm.xlu0 %4846, %v3966_v60  }
  0xc2   : > { %4467 = vmatmul.mubr.msk.bf16.gmra.mrb[64].mxu1 %vm388_vm1, %v4884_v61 }
  0xc3   : > { %4470 = vmatprep.mubr.msk.bf16.mxu1 %vm5084_vm0, %v5083_v1 }
  0xc4   : > { %v5594_v4 = vpop.permute.xlu1 %943  ;;  %v5596_v5 = vpop.permute.xlu0 %938 }
  0xc5   : > { %1003 = vperm.xlu1 %4847, %v3911_v2   ;;  %998 = vperm.xlu0 %4846, %v3910_v3  }
  0xc8   : > { %v5605_v9 = vpop.permute.xlu1 %953  ;;  %v5607_v10 = vpop.permute.xlu0 %948 }
  0xc9   : > { %1759 = vperm.xlu1 %4847, %v4023_v6   ;;  %1754 = vperm.xlu0 %4846, %v4022_v7  }
  0xca   : > { %4471 = vmatmul.mubr.msk.bf16.gmra.mrb[68].mxu1 %vm388_vm1, %v4885_v8 }
  0xcb   : > { %4474 = vmatprep.mubr.msk.bf16.mxu1 %vm5084_vm0, %v5083_v1 }
  0xcc   : > { %v5612_v11 = vpop.permute.xlu1 %963  ;;  %v5614_v12 = vpop.permute.xlu0 %958 }
  0xd0   : > { %v5619_v15 = vpop.permute.xlu1 %973  ;;  %v5621_v16 = vpop.permute.xlu0 %968 }
  0xd2   : > { %4475 = vmatmul.mubr.msk.bf16.gmra.mrb[72].mxu1 %vm388_vm1, %v4886_v13 }
  0xd3   : > { %4478 = vmatprep.mubr.msk.bf16.mxu1 %vm5084_vm0, %v5083_v1 }
  0xd4   : > { %v5627_v17 = vpop.permute.xlu1 %983  ;;  %v5629_v18 = vpop.permute.xlu0 %978 }
  0xd8   : > { %v547_v20 = vpop.permute.xlu1 %546  ;;  %v542_v21 = vpop.permute.xlu0 %541 }
  0xda   : > { %4479 = vmatmul.mubr.msk.bf16.gmra.mrb[76].mxu1 %vm388_vm1, %v4887_v19 }
  0xdc   : > { %v5633_v22 = vpop.permute.xlu1 %993  ;;  %v5635_v23 = vpop.permute.xlu0 %988 }
  0xe0   : > { %v5637_v24 = vpop.permute.xlu1 %556  ;;  %v5639_v25 = vpop.permute.xlu0 %551 }
  0xe4   : > { %v5641_v26 = vpop.permute.xlu1 %566  ;;  %v5643_v1 = vpop.permute.xlu0 %561 }
  0xe8   : > { %v5645_v27 = vpop.permute.xlu1 %576  ;;  %v5647_v28 = vpop.permute.xlu0 %571 }
  0xec   : > { %v5649_v29 = vpop.permute.xlu1 %586  ;;  %v5651_v30 = vpop.permute.xlu0 %581 }
  0xf0   : > { %v5653_v31 = vpop.permute.xlu1 %596  ;;  %v5655_v32 = vpop.permute.xlu0 %591 }
  0xf4   : > { %v5657_v33 = vpop.permute.xlu1 %606  ;;  %v5659_v34 = vpop.permute.xlu0 %601 }
  0xf8   : > { %v617_v35 = vpop.permute.xlu1 %616  ;;  %v612_v36 = vpop.permute.xlu0 %611 }
  0xfc   : > { %v627_v37 = vpop.permute.xlu1 %626  ;;  %v622_v38 = vpop.permute.xlu0 %621 }
 0x100   : > { %v5661_v39 = vpop.permute.xlu1 %1301  ;;  %v5663_v40 = vpop.permute.xlu0 %1296 }
 0x104   : > { %v5665_v41 = vpop.permute.xlu1 %1311  ;;  %v5667_v42 = vpop.permute.xlu0 %1306 }
 0x108   : > { %v5669_v43 = vpop.permute.xlu1 %1679  ;;  %v5671_v44 = vpop.permute.xlu0 %1674 }
 0x109   : > { %6140 = vst [vmem:[#allocation9_spill] sm:$0xff] %v5669_v43  ;;  %6141 = vst [vmem:[#allocation10_spill] sm:$0xff] %v5671_v44 }
 0x10c   : > { %v5673_v45 = vpop.permute.xlu1 %1689  ;;  %v5675_v46 = vpop.permute.xlu0 %1684 }
 0x10d   : > { %6142 = vst [vmem:[#allocation11_spill] sm:$0xff] %v5673_v45  ;;  %6143 = vst [vmem:[#allocation12_spill] sm:$0xff] %v5675_v46 }
 0x110   : > { %v5677_v47 = vpop.permute.xlu1 %1321  ;;  %v5679_v48 = vpop.permute.xlu0 %1316 }
 0x114   : > { %v5686_v50 = vpop.permute.xlu1 %1331  ;;  %v5688_v51 = vpop.permute.xlu0 %1326 }
 0x115   : > { %6144 = vst [vmem:[#allocation13_spill] sm:$0xff] %v5686_v50  ;;  %v506_v52 = vpop.f32.mrb[0].mxu1  ;;  %v450_v53 = vpop.f32.mrb[0].mxu0 }
 0x116   : > { %v507_v54 = vadd.f32 %v5684_v49, %v506_v52  ;;  %v4362_v55 = vpop.f32.mrb[1].mxu1  ;;  %v451_v56 = vadd.f32 %v5684_v49, %v450_v53  ;;  %v4334_v59 = vpop.f32.mrb[1].mxu0 }
 0x117   : > { %v509_v60 = vpop.f32.mrb[2].mxu1  ;;  %v453_v61 = vpop.f32.mrb[2].mxu0 }
 0x118   : > { %v535_v2 = vmax.f32 %v507_v54, 0.0  ;;  %v510_v3 = vadd.f32 %v5684_v49, %v509_v60  ;;  %v5693_v6 = vpop.permute.xlu1 %1699  ;;  %v5695_v7 = vpop.permute.xlu0 %1694  ;;  %v521_v8 = vmax.f32 %v451_v56, 0.0  ;;  %v454_v13 = vadd.f32 %v5684_v49, %v453_v61 }
 0x119   : > { %6145 = vst [vmem:[#allocation14_spill] sm:$0xff] %v5693_v6  ;;  %6146 = vst [vmem:[#allocation15_spill] sm:$0xff] %v5695_v7  ;;  %v4363_v19 = vpop.f32.mrb[3].mxu1  ;;  %v4335_v45 = vpop.f32.mrb[3].mxu0 }
 0x11a   : > { %v536_v46 = vmax.f32 %v510_v3, 0.0  ;;  %v629_v52 = vmul.f32 %v542_v21, %v521_v8  ;;  %v522_v55 = vmax.f32 %v454_v13, 0.0  ;;  %v643_v43 = vmul.f32 %v612_v36, %v535_v2 }
 0x11c   : > { %v644_v53 = vmul.f32 %v617_v35, %v536_v46  ;;  %v5698_v59 = vpop.permute.xlu1 %1709  ;;  %v5700_v44 = vpop.permute.xlu0 %1704  ;;  %v630_v54 = vmul.f32 %v547_v20, %v522_v55 }
 0x11d   : > { %v514_v60 = vpop.f32.mrb[4].mxu1  ;;  %v458_v50 = vpop.f32.mrb[4].mxu0 }
 0x11e   : > { %v5702_v6 = vpack.c.bf16 %v644_v53, %v643_v43  ;;  %v515_v56 = vadd.f32 %v5684_v49, %v514_v60  ;;  %v4366_v7 = vpop.f32.mrb[5].mxu1  ;;  %v5705_v61 = vpack.c.bf16 %v630_v54, %v629_v52  ;;  %v459_v45 = vadd.f32 %v5684_v49, %v458_v50  ;;  %v4338_v21 = vpop.f32.mrb[5].mxu0 }
 0x11f   : > { %v517_v3 = vpop.f32.mrb[6].mxu1  ;;  %v461_v36 = vpop.f32.mrb[6].mxu0 }
 0x120   : > { %663 = vst [vmem:[#allocation2 + $0x38] sm:$0xff] %v5702_v6  ;;  %v537_v35 = vmax.f32 %v515_v56, 0.0  ;;  %v518_v46 = vadd.f32 %v5684_v49, %v517_v3  ;;  %v523_v20 = vmax.f32 %v459_v45, 0.0  ;;  %v462_v2 = vadd.f32 %v5684_v49, %v461_v36  ;;  %4530 = vmatprep.mubr.bf16.mxu1 %v5705_v61  ;;  %v4367_v43 = vpop.f32.mrb[7].mxu1  ;;  %v4339_v8 = vpop.f32.mrb[7].mxu0 }
 0x121   : > { %v5713_v55 = vpop.permute.xlu1 %1341  ;;  %v5715_v53 = vpop.permute.xlu0 %1336 }
 0x122   : > { %v538_v7 = vmax.f32 %v518_v46, 0.0  ;;  %v631_v13 = vmul.f32 %v5639_v25, %v523_v20  ;;  %v524_v19 = vmax.f32 %v462_v2, 0.0  ;;  %v645_v50 = vmul.f32 %v622_v38, %v537_v35  ;;  %v4905_v20 = vld [vmem:[#allocation3 + $0xc8] sm:$0xff]  }
 0x124   : > { %v646_v52 = vmul.f32 %v627_v37, %v538_v7  ;;  %v632_v54 = vmul.f32 %v5637_v24, %v524_v19 }
 0x125   : > { %v466_v60 = vpop.f32.mrb[8].mxu0  ;;  %v827_v56 = vpop.f32.mrb[8].mxu1 }
 0x126   : > { %v655_v45 = vpack.c.bf16 %v646_v52, %v645_v50  ;;  %v5718_v21 = vpack.c.bf16 %v632_v54, %v631_v13  ;;  %v467_v3 = vadd.f32 %v5684_v49, %v466_v60  ;;  %v828_v36 = vadd.f32 %v5684_v49, %v827_v56  ;;  %v4342_v46 = vpop.f32.mrb[9].mxu0  ;;  %v4372_v25 = vpop.f32.mrb[9].mxu1  ;;  %v4906_v52 = vld [vmem:[#allocation3 + $0xd0] sm:$0xff]  }
 0x127   : > { %v469_v38 = vpop.f32.mrb[10].mxu0  ;;  %v830_v37 = vpop.f32.mrb[10].mxu1 }
 0x128   : > { %664 = vst [vmem:[#allocation2 + $0x40] sm:$0xff] %v655_v45  ;;  %657 = vst [vmem:[#allocation2 + $0x8] sm:$0xff] %v5718_v21  ;;  %v525_v35 = vmax.f32 %v467_v3, 0.0  ;;  %v898_v2 = vmax.f32 %v828_v36, 0.0  ;;  %v470_v24 = vadd.f32 %v5684_v49, %v469_v38  ;;  %v831_v43 = vadd.f32 %v5684_v49, %v830_v37  ;;  %4531 = vmatmul.mubr.bf16.vlgmr.msra.gmra.mrb[80].mxu1 %v5718_v21  ;;  %v4373_v8 = vpop.f32.mrb[11].mxu1  ;;  %v4343_v7 = vpop.f32.mrb[11].mxu0 }
 0x129   : > { %4579 = vmatpush3.bf16.msra.mxu1 %v5578_v62  ;;  %v5728_v54 = vpop.permute.xlu1 %1351  ;;  %v5730_v60 = vpop.permute.xlu0 %1346 }
 0x12a   : > { %v633_v13 = vmul.f32 %v5643_v1, %v525_v35  ;;  %v526_v19 = vmax.f32 %v470_v24, 0.0  ;;  %v899_v50 = vmax.f32 %v831_v43, 0.0  ;;  %4580 = vmatprep.subr.bf16.mxu1 %v4905_v20  ;;  %v1006_v56 = vmul.f32 %v5569_v58, %v898_v2  ;;  %v4907_v24 = vld [vmem:[#allocation3 + $0xd8] sm:$0xff]  }
 0x12c   : > { %v634_v45 = vmul.f32 %v5641_v26, %v526_v19  ;;  %v1007_v3 = vmul.f32 %v5582_v0, %v899_v50  ;;  %v4909_v50 = vld [vmem:[#allocation3 + $0xe0] sm:$0xff]  }
 0x12d   : > { %v474_v36 = vpop.f32.mrb[12].mxu0  ;;  %v835_v46 = vpop.f32.mrb[12].mxu1  ;;  %4581 = vmatpush3.bf16.msra.mxu1 %v4905_v20 }
 0x12e   : > { %v5735_v62 = vpack.c.bf16 %v634_v45, %v633_v13  ;;  %v1024_v1 = vpack.c.bf16 %v1007_v3, %v1006_v56  ;;  %v475_v25 = vadd.f32 %v5684_v49, %v474_v36  ;;  %v836_v38 = vadd.f32 %v5684_v49, %v835_v46  ;;  %v4346_v37 = vpop.f32.mrb[13].mxu0  ;;  %v4376_v35 = vpop.f32.mrb[13].mxu1  ;;  %4582 = vmatprep.subr.bf16.mxu1 %v4906_v52 }
 0x12f   : > { %v477_v43 = vpop.f32.mrb[14].mxu0  ;;  %v838_v58 = vpop.f32.mrb[14].mxu1 }
 0x130   : > { %658 = vst [vmem:[#allocation2 + $0x10] sm:$0xff] %v5735_v62  ;;  %v527_v26 = vmax.f32 %v475_v25, 0.0  ;;  %v900_v0 = vmax.f32 %v836_v38, 0.0  ;;  %v478_v2 = vadd.f32 %v5684_v49, %v477_v43  ;;  %v839_v20 = vadd.f32 %v5684_v49, %v838_v58  ;;  %4498 = vmatprep.mubr.bf16.mxu0 %v1024_v1  ;;  %4534 = vmatprep.mubr.bf16.mxu1 %v5735_v62  ;;  %v4377_v8 = vpop.f32.mrb[15].mxu1  ;;  %v4347_v7 = vpop.f32.mrb[15].mxu0 }
 0x131   : > { %4583 = vmatpush3.bf16.msra.mxu1 %v4906_v52  ;;  %v5743_v56 = vpop.permute.xlu1 %1719  ;;  %v5745_v45 = vpop.permute.xlu0 %1714 }
 0x132   : > { %v528_v13 = vmax.f32 %v478_v2, 0.0  ;;  %v901_v19 = vmax.f32 %v839_v20, 0.0  ;;  %4584 = vmatprep.subr.bf16.mxu1 %v4907_v24  ;;  %v635_v3 = vmul.f32 %v5647_v28, %v527_v26  ;;  %v1008_v36 = vmul.f32 %v5567_v57, %v900_v0  ;;  %v4910_v28 = vld [vmem:[#allocation3 + $0x88] sm:$0xff]  }
 0x133   : > { %v4911_v26 = vld [vmem:[#allocation3 + $0xe8] sm:$0xff]  }
 0x134   : > { %v636_v46 = vmul.f32 %v5645_v27, %v528_v13  ;;  %v1009_v1 = vmul.f32 %v5580_v63, %v901_v19 }
 0x135   : > { %v482_v25 = vpop.f32.mrb[16].mxu0  ;;  %v843_v38 = vpop.f32.mrb[16].mxu1  ;;  %4585 = vmatpush3.bf16.msra.mxu1 %v4907_v24 }
 0x136   : > { %v5751_v52 = vpack.c.bf16 %v636_v46, %v635_v3  ;;  %v1025_v37 = vpack.c.bf16 %v1009_v1, %v1008_v36  ;;  %v483_v35 = vadd.f32 %v5684_v49, %v482_v25  ;;  %v844_v43 = vadd.f32 %v5684_v49, %v843_v38  ;;  %v4350_v58 = vpop.f32.mrb[17].mxu0  ;;  %v4380_v2 = vpop.f32.mrb[17].mxu1  ;;  %4586 = vmatprep.subr.bf16.mxu1 %v4909_v50  ;;  %v4912_v3 = vld [vmem:[#allocation3 + $0x90] sm:$0xff]  }
 0x137   : > { %v485_v57 = vpop.f32.mrb[18].mxu0  ;;  %v846_v0 = vpop.f32.mrb[18].mxu1  ;;  %v4913_v36 = vld [vmem:[#allocation3 + $0xf0] sm:$0xff]  }
 0x138   : > { %659 = vst [vmem:[#allocation2 + $0x18] sm:$0xff] %v5751_v52  ;;  %1035 = vst [vmem:[#allocation2 + $0x58] sm:$0xff] %v1025_v37  ;;  %v529_v63 = vmax.f32 %v483_v35, 0.0  ;;  %v902_v27 = vmax.f32 %v844_v43, 0.0  ;;  %v486_v24 = vadd.f32 %v5684_v49, %v485_v57  ;;  %v847_v20 = vadd.f32 %v5684_v49, %v846_v0  ;;  %4499 = vmatmul.mubr.bf16.vlgmr.msra.gmra.mrb[64].mxu0 %v1025_v37  ;;  %v4381_v8 = vpop.f32.mrb[19].mxu1  ;;  %v4351_v7 = vpop.f32.mrb[19].mxu0 }
 0x139   : > { %4535 = vmatmul.mubr.bf16.gmra.mrb[84].mxu1 %v5751_v52  ;;  %4547 = vmatpush3.bf16.msra.mxu0 %v5617_v14  ;;  %v5760_v46 = vpop.permute.xlu1 %1729  ;;  %v5762_v1 = vpop.permute.xlu0 %1724 }
 0x13a   : > { %4587 = vmatpush3.bf16.msra.mxu1 %v4909_v50  ;;  %v530_v13 = vmax.f32 %v486_v24, 0.0  ;;  %v903_v19 = vmax.f32 %v847_v20, 0.0  ;;  %4548 = vmatprep.subr.bf16.mxu0 %v4910_v28  ;;  %v637_v25 = vmul.f32 %v5651_v30, %v529_v63  ;;  %v1010_v38 = vmul.f32 %v5596_v5, %v902_v27  ;;  %v4914_v30 = vld [vmem:[#allocation3 + $0x98] sm:$0xff]  }
 0x13b   : > { %4588 = vmatprep.subr.bf16.mxu1 %v4911_v26  ;;  %v4915_v5 = vld [vmem:[#allocation3 + $0xf8] sm:$0xff]  }
 0x13c   : > { %v638_v37 = vmul.f32 %v5649_v29, %v530_v13  ;;  %v1011_v35 = vmul.f32 %v5594_v4, %v903_v19  ;;  %v4916_v19 = vld [vmem:[#allocation3 + $0xa0] sm:$0xff]  }
 0x13d   : > { %v490_v14 = vpop.f32.mrb[20].mxu0  ;;  %v851_v50 = vpop.f32.mrb[20].mxu1  ;;  %4549 = vmatpush3.bf16.msra.mxu0 %v4910_v28 }
 0x13e   : > { %4589 = vmatpush3.bf16.msra.mxu1 %v4911_v26  ;;  %v5768_v43 = vpack.c.bf16 %v638_v37, %v637_v25  ;;  %v1026_v58 = vpack.c.bf16 %v1011_v35, %v1010_v38  ;;  %v491_v2 = vadd.f32 %v5684_v49, %v490_v14  ;;  %v852_v57 = vadd.f32 %v5684_v49, %v851_v50  ;;  %v4354_v0 = vpop.f32.mrb[21].mxu0  ;;  %v4384_v24 = vpop.f32.mrb[21].mxu1  ;;  %v5776_v25 = vld [vmem:[#allocation3 + $0x140] sm:$0xff]  }
 0x13f   : > { %4550 = vmatprep.subr.bf16.mxu0 %v4912_v3  ;;  %v493_v63 = vpop.f32.mrb[22].mxu0  ;;  %v854_v29 = vpop.f32.mrb[22].mxu1  ;;  %4590 = vmatprep.subr.bf16.mxu1 %v4913_v36 }
 0x140   : > { %660 = vst [vmem:[#allocation2 + $0x20] sm:$0xff] %v5768_v43  ;;  %1036 = vst [vmem:[#allocation2 + $0x60] sm:$0xff] %v1026_v58  ;;  %v531_v4 = vmax.f32 %v491_v2, 0.0  ;;  %v904_v28 = vmax.f32 %v852_v57, 0.0  ;;  %v494_v26 = vadd.f32 %v5684_v49, %v493_v63  ;;  %v855_v27 = vadd.f32 %v5684_v49, %v854_v29  ;;  %4502 = vmatprep.mubr.bf16.mxu0 %v1026_v58  ;;  %v4385_v20 = vpop.f32.mrb[23].mxu1  ;;  %v4355_v8 = vpop.f32.mrb[23].mxu0 }
 0x141   : > { %4538 = vmatprep.mubr.bf16.mxu1 %v5768_v43  ;;  %4551 = vmatpush3.bf16.msra.mxu0 %v4912_v3  ;;  %v5778_v38 = vpop.permute.xlu1 %1361  ;;  %v5780_v37 = vpop.permute.xlu0 %1356  ;;  %v4918_v8 = vld [vmem:[#allocation3 + $0xb0] sm:$0xff]  }
 0x142   : > { %4591 = vmatpush3.bf16.msra.mxu1 %v4913_v36  ;;  %v532_v7 = vmax.f32 %v494_v26, 0.0  ;;  %v905_v13 = vmax.f32 %v855_v27, 0.0  ;;  %4552 = vmatprep.subr.bf16.mxu0 %v4914_v30  ;;  %v639_v35 = vmul.f32 %v5655_v32, %v531_v4  ;;  %v1012_v14 = vmul.f32 %v5607_v10, %v904_v28  ;;  %v4917_v32 = vld [vmem:[#allocation3 + $0xa8] sm:$0xff]  }
 0x143   : > { %4592 = vmatprep.subr.bf16.mxu1 %v4915_v5 }
 0x144   : > { %v640_v50 = vmul.f32 %v5653_v31, %v532_v7  ;;  %v1013_v3 = vmul.f32 %v5605_v9, %v905_v13 }
 0x145   : > { %v498_v36 = vpop.f32.mrb[24].mxu0  ;;  %v859_v58 = vpop.f32.mrb[24].mxu1  ;;  %4553 = vmatpush3.bf16.msra.mxu0 %v4914_v30 }
 0x146   : > { %4593 = vmatpush3.bf16.msra.mxu1 %v4915_v5  ;;  %v5786_v2 = vpack.c.bf16 %v640_v50, %v639_v35  ;;  %v1027_v57 = vpack.c.bf16 %v1013_v3, %v1012_v14  ;;  %v499_v0 = vadd.f32 %v5684_v49, %v498_v36  ;;  %v860_v24 = vadd.f32 %v5684_v49, %v859_v58  ;;  %v4358_v63 = vpop.f32.mrb[25].mxu0  ;;  %v4388_v29 = vpop.f32.mrb[25].mxu1 }
 0x147   : > { %4554 = vmatprep.subr.bf16.mxu0 %v4916_v19  ;;  %v501_v10 = vpop.f32.mrb[26].mxu0  ;;  %v862_v4 = vpop.f32.mrb[26].mxu1  ;;  %4642 = vmatprep.subr.bf16.mxu1 %v5776_v25 }
 0x148   : > { %661 = vst [vmem:[#allocation2 + $0x28] sm:$0xff] %v5786_v2  ;;  %1037 = vst [vmem:[#allocation2 + $0x68] sm:$0xff] %v1027_v57  ;;  %v533_v9 = vmax.f32 %v499_v0, 0.0  ;;  %v906_v31 = vmax.f32 %v860_v24, 0.0  ;;  %v502_v30 = vadd.f32 %v5684_v49, %v501_v10  ;;  %v863_v5 = vadd.f32 %v5684_v49, %v862_v4  ;;  %4503 = vmatmul.mubr.bf16.gmra.mrb[68].mxu0 %v1027_v57  ;;  %v4389_v28 = vpop.f32.mrb[27].mxu1  ;;  %v4359_v26 = vpop.f32.mrb[27].mxu0 }
 0x149   : > { %4539 = vmatmul.mubr.bf16.gmra.mrb[88].mxu1 %v5786_v2  ;;  %4555 = vmatpush3.bf16.msra.mxu0 %v4916_v19  ;;  %v5795_v7 = vpop.permute.xlu1 %1371  ;;  %v5797_v13 = vpop.permute.xlu0 %1366  ;;  %v5812_v28 = vld [vmem:[#allocation3 + $0x100] sm:$0xff]  }
 0x14a   : > { %v534_v27 = vmax.f32 %v502_v30, 0.0  ;;  %v907_v20 = vmax.f32 %v863_v5, 0.0  ;;  %4556 = vmatprep.subr.bf16.mxu0 %v4917_v32  ;;  %v641_v35 = vmul.f32 %v5659_v34, %v533_v9  ;;  %v1014_v14 = vmul.f32 %v5614_v12, %v906_v31  ;;  %v4919_v34 = vld [vmem:[#allocation3 + $0xb8] sm:$0xff]  }
 0x14c   : > { %v642_v50 = vmul.f32 %v5657_v33, %v534_v27  ;;  %v1015_v3 = vmul.f32 %v5612_v11, %v907_v20 }
 0x14d   : > { %v867_v36 = vpop.f32.mrb[28].mxu1  ;;  %v1205_v58 = vpop.f32.mrb[28].mxu0  ;;  %4557 = vmatpush3.bf16.msra.mxu0 %v4917_v32 }
 0x14e   : > { %v5803_v19 = vpack.c.bf16 %v642_v50, %v641_v35  ;;  %v1028_v57 = vpack.c.bf16 %v1015_v3, %v1014_v14  ;;  %v868_v0 = vadd.f32 %v5684_v49, %v867_v36  ;;  %v1206_v24 = vadd.f32 %v5684_v49, %v1205_v58  ;;  %v4392_v63 = vpop.f32.mrb[29].mxu1  ;;  %v4410_v29 = vpop.f32.mrb[29].mxu0  ;;  %4558 = vmatprep.subr.bf16.mxu0 %v4918_v8 }
 0x14f   : > { %v870_v10 = vpop.f32.mrb[30].mxu1  ;;  %v1208_v12 = vpop.f32.mrb[30].mxu0 }
 0x150   : > { %662 = vst [vmem:[#allocation2 + $0x30] sm:$0xff] %v5803_v19  ;;  %1038 = vst [vmem:[#allocation2 + $0x70] sm:$0xff] %v1028_v57  ;;  %v908_v11 = vmax.f32 %v868_v0, 0.0  ;;  %v1276_v33 = vmax.f32 %v1206_v24, 0.0  ;;  %v871_v32 = vadd.f32 %v5684_v49, %v870_v10  ;;  %v1209_v4 = vadd.f32 %v5684_v49, %v1208_v12  ;;  %v4393_v9 = vpop.f32.mrb[31].mxu1  ;;  %v4411_v31 = vpop.f32.mrb[31].mxu0  ;;  %4506 = vmatprep.mubr.bf16.mxu0 %v1028_v57 }
 0x151   : > { %4542 = vmatprep.mubr.bf16.mxu1 %v5803_v19  ;;  %4559 = vmatpush3.bf16.msra.mxu0 %v4918_v8  ;;  %v5814_v26 = vpop.permute.xlu1 %1739  ;;  %v5816_v27 = vpop.permute.xlu0 %1734 }
 0x152   : > { %4543 = vmatmul.mubr.bf16.gmra.mrb[92].mxu1 %v5702_v6  ;;  %v909_v30 = vmax.f32 %v871_v32, 0.0  ;;  %v1277_v5 = vmax.f32 %v1209_v4, 0.0  ;;  %4560 = vmatprep.subr.bf16.mxu0 %v4919_v34  ;;  %v1016_v20 = vmul.f32 %v5621_v16, %v908_v11  ;;  %v1384_v35 = vmul.f32 %v5663_v40, %v1276_v33 }
 0x153   : > { %v2168_v33 = vshll.u32 %v5705_v61, 16 }
 0x154   : > { %v1017_v14 = vmul.f32 %v5619_v15, %v909_v30  ;;  %v1385_v50 = vmul.f32 %v5661_v39, %v1277_v5 }
 0x155   : > { %v875_v3 = vpop.f32.mrb[32].mxu1  ;;  %v1213_v6 = vpop.f32.mrb[32].mxu0  ;;  %4561 = vmatpush3.bf16.msra.mxu0 %v4919_v34 }
 0x156   : > { %v1029_v8 = vpack.c.bf16 %v1017_v14, %v1016_v20  ;;  %v1402_v36 = vpack.c.bf16 %v1385_v50, %v1384_v35  ;;  %v876_v58 = vadd.f32 %v5684_v49, %v875_v3  ;;  %v1214_v57 = vadd.f32 %v5684_v49, %v1213_v6  ;;  %v4396_v0 = vpop.f32.mrb[33].mxu1  ;;  %v4414_v24 = vpop.f32.mrb[33].mxu0  ;;  %4610 = vmatprep.subr.bf16.mxu0 %v5812_v28 }
 0x157   : > { %v878_v16 = vpop.f32.mrb[34].mxu1  ;;  %v1216_v63 = vpop.f32.mrb[34].mxu0  ;;  %v4925_v0 = vld [vmem:[#allocation3 + $0x148] sm:$0xff]  }
 0x158   : > { %1039 = vst [vmem:[#allocation2 + $0x78] sm:$0xff] %v1029_v8  ;;  %v910_v40 = vmax.f32 %v876_v58, 0.0  ;;  %v1278_v15 = vmax.f32 %v1214_v57, 0.0  ;;  %v879_v39 = vadd.f32 %v5684_v49, %v878_v16  ;;  %v1217_v29 = vadd.f32 %v5684_v49, %v1216_v63  ;;  %v4397_v34 = vpop.f32.mrb[35].mxu1  ;;  %v4415_v10 = vpop.f32.mrb[35].mxu0  ;;  %4507 = vmatmul.mubr.bf16.gmra.mrb[72].mxu0 %v1029_v8  ;;  %4594 = vmatprep.mubr.bf16.mxu1 %v1402_v36 }
 0x159   : > { %v2803_v32 = vshll.u32 %v1402_v36, 16  ;;  %v5828_v4 = vpop.permute.xlu1 %1749  ;;  %v5830_v9 = vpop.permute.xlu0 %1744  ;;  %v2170_v16 = vrot.slane %v2168_v33, 1  ;;  %v2173_v34 = vshll.u32 %v5718_v21, 16  ;;  %v2801_v10 = vshrl.u32 %v1402_v36, 16  ;;  %v4927_v33 = vld [vmem:[#allocation3 + $0x150] sm:$0xff]  }
 0x15a   : > { %v911_v12 = vmax.f32 %v879_v39, 0.0  ;;  %v1279_v11 = vmax.f32 %v1217_v29, 0.0  ;;  %v1018_v31 = vmul.f32 %v5629_v18, %v910_v40  ;;  %v1386_v30 = vmul.f32 %v5667_v42, %v1278_v15 }
 0x15b   : > { %v2166_v42 = vshrl.u32 %v5705_v61, 16 }
 0x15c   : > { %v1019_v5 = vmul.f32 %v5627_v17, %v911_v12  ;;  %v1387_v20 = vmul.f32 %v5665_v41, %v1279_v11  ;;  %v2805_v17 = vrot.slane %v2803_v32, 1 }
 0x15d   : > { %v883_v35 = vpop.f32.mrb[36].mxu1  ;;  %v1221_v14 = vpop.f32.mrb[36].mxu0  ;;  %v2171_v32 = vor.u32 %v2170_v16, %v2166_v42  ;;  %v4929_v16 = vld [vmem:[#allocation3 + $0x158] sm:$0xff]  }
 0x15e   : > { %v1030_v50 = vpack.c.bf16 %v1019_v5, %v1018_v31  ;;  %v5836_v3 = vpack.c.bf16 %v1387_v20, %v1386_v30  ;;  %v884_v6 = vadd.f32 %v5684_v49, %v883_v35  ;;  %v1222_v8 = vadd.f32 %v5684_v49, %v1221_v14  ;;  %v4400_v58 = vpop.f32.mrb[37].mxu1  ;;  %v4418_v57 = vpop.f32.mrb[37].mxu0 }
 0x15f   : > { %v886_v24 = vpop.f32.mrb[38].mxu1  ;;  %v1224_v18 = vpop.f32.mrb[38].mxu0  ;;  %v2806_v31 = vor.u32 %v2805_v17, %v2801_v10  ;;  %v2177_v58 = vshrl.u32 %v5718_v21, 16  ;;  %v2181_v57 = vshll.u32 %v5735_v62, 16 }
 0x160   : > { %1040 = vst [vmem:[#allocation2 + $0x80] sm:$0xff] %v1030_v50  ;;  %v912_v41 = vmax.f32 %v884_v6, 0.0  ;;  %v1280_v63 = vmax.f32 %v1222_v8, 0.0  ;;  %v887_v40 = vadd.f32 %v5684_v49, %v886_v24  ;;  %v1225_v15 = vadd.f32 %v5684_v49, %v1224_v18  ;;  %v4401_v39 = vpop.f32.mrb[39].mxu1  ;;  %v4419_v29 = vpop.f32.mrb[39].mxu0  ;;  %4510 = vmatprep.mubr.bf16.mxu0 %v1030_v50  ;;  %4595 = vmatmul.mubr.bf16.vlgmr.msra.gmra.mrb[96].mxu1 %v5836_v3 }
 0x161   : > { %4643 = vmatpush3.bf16.msra.mxu1 %v5776_v25  ;;  %v2808_v61 = vshll.u32 %v5836_v3, 16  ;;  %v5847_v5 = vpop.permute.xlu1 %1381  ;;  %v5849_v20 = vpop.permute.xlu0 %1376  ;;  %v2175_v8 = vrot.slane %v2173_v34, 1  ;;  %v2183_v10 = vrot.slane %v2181_v57, 1 }
 0x162   : > { %v913_v12 = vmax.f32 %v887_v40, 0.0  ;;  %v1281_v11 = vmax.f32 %v1225_v15, 0.0  ;;  %4644 = vmatprep.subr.bf16.mxu1 %v4925_v0  ;;  %v1020_v35 = vmul.f32 %v5635_v23, %v912_v41  ;;  %v1388_v14 = vmul.f32 %v5679_v48, %v1280_v63 }
 0x163   : > { %v2810_v30 = vrot.slane %v2808_v61, 1  ;;  %v2176_v21 = vsel %vm2164_vm2, %v2171_v32, %v2175_v8  ;;  %v2812_v61 = vshrl.u32 %v5836_v3, 16 }
 0x164   : > { %v1021_v25 = vmul.f32 %v5633_v22, %v913_v12  ;;  %v1389_v36 = vmul.f32 %v5677_v47, %v1281_v11 }
 0x165   : > { %v891_v50 = vpop.f32.mrb[40].mxu1  ;;  %v1229_v6 = vpop.f32.mrb[40].mxu0  ;;  %4645 = vmatpush3.bf16.msra.mxu1 %v4925_v0  ;;  %v5858_v24 = vsel %vm2164_vm2, %v2806_v31, %v2810_v30  ;;  %v2189_v0 = vshll.u32 %v5751_v52, 16  ;;  %v2179_v31 = vor.u32 %v2177_v58, %v2175_v8  ;;  %v2197_v8 = vshll.u32 %v5768_v43, 16 }
 0x166   : > { %v1031_v18 = vpack.c.bf16 %v1021_v25, %v1020_v35  ;;  %v5860_v42 = vpack.c.bf16 %v1389_v36, %v1388_v14  ;;  %v892_v23 = vadd.f32 %v5684_v49, %v891_v50  ;;  %v1230_v22 = vadd.f32 %v5684_v49, %v1229_v6  ;;  %v4404_v48 = vpop.f32.mrb[41].mxu1  ;;  %v4422_v47 = vpop.f32.mrb[41].mxu0  ;;  %4646 = vmatprep.subr.bf16.mxu1 %v4927_v33  ;;  %v4931_v35 = vld [vmem:[#allocation3 + $0x160] sm:$0xff]  }
 0x167   : > { %v894_v17 = vpop.f32.mrb[42].mxu1  ;;  %v1232_v41 = vpop.f32.mrb[42].mxu0  ;;  %v2185_v36 = vshrl.u32 %v5735_v62, 16  ;;  %v2191_v50 = vrot.slane %v2189_v0, 1  ;;  %v2814_v6 = vor.u32 %v2812_v61, %v2810_v30 }
 0x168   : > { %1041 = vst [vmem:[#allocation2 + $0x88] sm:$0xff] %v1031_v18  ;;  %v914_v63 = vmax.f32 %v892_v23, 0.0  ;;  %v1282_v40 = vmax.f32 %v1230_v22, 0.0  ;;  %v895_v15 = vadd.f32 %v5684_v49, %v894_v17  ;;  %v1233_v39 = vadd.f32 %v5684_v49, %v1232_v41  ;;  %v4405_v29 = vpop.f32.mrb[43].mxu1  ;;  %v4423_v34 = vpop.f32.mrb[43].mxu0  ;;  %4511 = vmatmul.mubr.bf16.gmra.mrb[76].mxu0 %v1031_v18  ;;  %4598 = vmatprep.mubr.bf16.mxu1 %v5860_v42  ;;  %v6147_v22 = vld [vmem:[#allocation13_spill] sm:$0xff] }
 0x169   : > { %4562 = vmatprep.mubr.bf16.mxu0 %v2176_v21  ;;  %4647 = vmatpush3.bf16.msra.mxu1 %v4927_v33  ;;  %v2816_v12 = vshll.u32 %v5860_v42, 16  ;;  %v1004_v14 = vpop.permute.xlu1 %1003  ;;  %v999_v25 = vpop.permute.xlu0 %998  ;;  %v2187_v17 = vor.u32 %v2185_v36, %v2183_v10  ;;  %v2205_v29 = vshll.u32 %v5786_v2, 16  ;;  %v4933_v34 = vld [vmem:[#allocation3 + $0x168] sm:$0xff]  }
 0x16a   : > { %v915_v11 = vmax.f32 %v895_v15, 0.0  ;;  %v1283_v32 = vmax.f32 %v1233_v39, 0.0  ;;  %4648 = vmatprep.subr.bf16.mxu1 %v4929_v16  ;;  %v1022_v23 = vmul.f32 %v999_v25, %v914_v63  ;;  %v1390_v57 = vmul.f32 %v5688_v51, %v1282_v40  ;;  %v4921_v63 = vld [vmem:[#allocation3 + $0x108] sm:$0xff]  }
 0x16b   : > { %v2818_v18 = vrot.slane %v2816_v12, 1  ;;  %v2184_v39 = vsel %vm2164_vm2, %v2179_v31, %v2183_v10  ;;  %v2199_v10 = vrot.slane %v2197_v8, 1  ;;  %v2820_v31 = vshrl.u32 %v5860_v42, 16 }
 0x16c   : > { %v1023_v33 = vmul.f32 %v1004_v14, %v915_v11  ;;  %v1391_v3 = vmul.f32 %v6147_v22, %v1283_v32  ;;  %v2201_v22 = vshrl.u32 %v5768_v43, 16 }
 0x16d   : > { %v1237_v48 = vpop.f32.mrb[44].mxu0  ;;  %v1583_v47 = vpop.f32.mrb[44].mxu1  ;;  %4649 = vmatpush3.bf16.msra.mxu1 %v4929_v16  ;;  %v5876_v58 = vsel %vm2164_vm2, %v2814_v6, %v2818_v18  ;;  %v2192_v16 = vsel %vm2164_vm2, %v2187_v17, %v2191_v50  ;;  %v6148_v17 = vld [vmem:[#allocation10_spill] sm:$0xff] }
 0x16e   : > { %v1032_v41 = vpack.c.bf16 %v1023_v33, %v1022_v23  ;;  %v5878_v62 = vpack.c.bf16 %v1391_v3, %v1390_v57  ;;  %v1238_v30 = vadd.f32 %v5684_v49, %v1237_v48  ;;  %v1584_v21 = vadd.f32 %v5684_v49, %v1583_v47  ;;  %v4426_v51 = vpop.f32.mrb[45].mxu0  ;;  %v4448_v0 = vpop.f32.mrb[45].mxu1  ;;  %4650 = vmatprep.subr.bf16.mxu1 %v4931_v35  ;;  %v4922_v33 = vld [vmem:[#allocation3 + $0x110] sm:$0xff]  }
 0x16f   : > { %v1240_v40 = vpop.f32.mrb[46].mxu0  ;;  %v1586_v15 = vpop.f32.mrb[46].mxu1  ;;  %v2193_v57 = vshrl.u32 %v5751_v52, 16  ;;  %v5893_v3 = vrot.slane %v2205_v29, 1  ;;  %v2213_v48 = vshll.u32 %v5803_v19, 16  ;;  %v2203_v51 = vor.u32 %v2201_v22, %v2199_v10  ;;  %v5913_v29 = vld [vmem:[#allocation2 + $0x38] sm:$0xff] }
 0x170   : > { %1042 = vst [vmem:[#allocation2 + $0x90] sm:$0xff] %v1032_v41  ;;  %v1284_v61 = vmax.f32 %v1238_v30, 0.0  ;;  %v1654_v12 = vmax.f32 %v1584_v21, 0.0  ;;  %v1241_v11 = vadd.f32 %v5684_v49, %v1240_v40  ;;  %v1587_v32 = vadd.f32 %v5684_v49, %v1586_v15  ;;  %v4449_v14 = vpop.f32.mrb[47].mxu1  ;;  %v4427_v25 = vpop.f32.mrb[47].mxu0  ;;  %4563 = vmatmul.mubr.bf16.vlgmr.msra.gmra.mrb[80].mxu0 %v2184_v39  ;;  %4599 = vmatmul.mubr.bf16.gmra.mrb[100].mxu1 %v5878_v62  ;;  %v6149_v30 = vld [vmem:[#allocation9_spill] sm:$0xff] }
 0x171   : > { %4566 = vmatprep.mubr.bf16.mxu0 %v2192_v16  ;;  %4611 = vmatpush3.bf16.msra.mxu0 %v5812_v28  ;;  %v2824_v36 = vshll.u32 %v5878_v62, 16  ;;  %v2822_v28 = vor.u32 %v2820_v31, %v2818_v18  ;;  %v4924_v16 = vld [vmem:[#allocation3 + $0x118] sm:$0xff]   ;;  %v2221_v22 = vshll.u32 %v5913_v29, 16 }
 0x172   : > { %v1285_v6 = vmax.f32 %v1241_v11, 0.0  ;;  %v1655_v23 = vmax.f32 %v1587_v32, 0.0  ;;  %4612 = vmatprep.subr.bf16.mxu0 %v4921_v63  ;;  %4651 = vmatpush3.bf16.msra.mxu1 %v4931_v35  ;;  %v1392_v42 = vmul.f32 %v5715_v53, %v1284_v61  ;;  %v5898_v8 = vmul.f32 %v6148_v17, %v1654_v12  ;;  %v4926_v17 = vld [vmem:[#allocation3 + $0x120] sm:$0xff]  }
 0x173   : > { %4652 = vmatprep.subr.bf16.mxu1 %v4933_v34  ;;  %v2826_v47 = vrot.slane %v2824_v36, 1  ;;  %v2195_v35 = vor.u32 %v2193_v57, %v2191_v50  ;;  %v4934_v50 = vld [vmem:[#allocation3 + $0x170] sm:$0xff]   ;;  %v2208_v11 = vsel %vm2164_vm2, %v2203_v51, %v5893_v3  ;;  %v2215_v32 = vrot.slane %v2213_v48, 1  ;;  %v4935_v57 = vld [vmem:[#allocation3 + $0x178] sm:$0xff]  }
 0x174   : > { %v1393_v41 = vmul.f32 %v5713_v55, %v1285_v6  ;;  %v5902_v52 = vmul.f32 %v6149_v30, %v1655_v23  ;;  %v6151_v51 = vld [vmem:[#allocation11_spill] sm:$0xff] }
 0x175   : > { %v1245_v21 = vpop.f32.mrb[48].mxu0  ;;  %v1591_v43 = vpop.f32.mrb[48].mxu1  ;;  %4613 = vmatpush3.bf16.msra.mxu0 %v4921_v63  ;;  %v5905_v0 = vsel %vm2164_vm2, %v2822_v28, %v2826_v47  ;;  %v2200_v12 = vsel %vm2164_vm2, %v2195_v35, %v2199_v10  ;;  %v2217_v10 = vshrl.u32 %v5803_v19, 16  ;;  %v6150_v19 = vld [vmem:[#allocation12_spill] sm:$0xff] }
 0x176   : > { %v5907_v18 = vpack.c.bf16 %v1393_v41, %v1392_v42  ;;  %v1780_v53 = vpack.c.bf16 %v5902_v52, %v5898_v8  ;;  %v1246_v40 = vadd.f32 %v5684_v49, %v1245_v21  ;;  %v1592_v55 = vadd.f32 %v5684_v49, %v1591_v43  ;;  %v4430_v15 = vpop.f32.mrb[49].mxu0  ;;  %v4452_v39 = vpop.f32.mrb[49].mxu1  ;;  %4614 = vmatprep.subr.bf16.mxu0 %v4922_v33 }
 0x177   : > { %v1248_v63 = vpop.f32.mrb[50].mxu0  ;;  %v1594_v61 = vpop.f32.mrb[50].mxu1  ;;  %4653 = vmatpush3.bf16.msra.mxu1 %v4933_v34  ;;  %v2828_v34 = vshrl.u32 %v5878_v62, 16  ;;  %v2209_v41 = vshrl.u32 %v5786_v2, 16  ;;  %v2219_v30 = vor.u32 %v2217_v10, %v2215_v32 }
 0x178   : > { %v1286_v14 = vmax.f32 %v1246_v40, 0.0  ;;  %v1656_v25 = vmax.f32 %v1592_v55, 0.0  ;;  %v1249_v31 = vadd.f32 %v5684_v49, %v1248_v63  ;;  %v1595_v36 = vadd.f32 %v5684_v49, %v1594_v61  ;;  %v4453_v6 = vpop.f32.mrb[51].mxu1  ;;  %v4431_v23 = vpop.f32.mrb[51].mxu0  ;;  %4567 = vmatmul.mubr.bf16.gmra.mrb[84].mxu0 %v2200_v12  ;;  %4602 = vmatprep.mubr.bf16.mxu1 %v5907_v18  ;;  %v2146_v55 = vld [vmem:[#allocation2 + $0x40] sm:$0x1] }
 0x179   : > { %4570 = vmatprep.mubr.bf16.mxu0 %v2208_v11  ;;  %4615 = vmatpush3.bf16.msra.mxu0 %v4922_v33  ;;  %v2832_v48 = vshll.u32 %v5907_v18, 16  ;;  %v2830_v21 = vor.u32 %v2828_v34, %v2826_v47  ;;  %v2211_v2 = vor.u32 %v2209_v41, %v5893_v3  ;;  %v2229_v6 = vshll.u32 %v2146_v55, 16  ;;  %v6152_v55 = vld [vmem:[#allocation15_spill] sm:$0xff] }
 0x17a   : > { %v1287_v28 = vmax.f32 %v1249_v31, 0.0  ;;  %v1657_v42 = vmax.f32 %v1595_v36, 0.0  ;;  %4616 = vmatprep.subr.bf16.mxu0 %v4924_v16  ;;  %4654 = vmatprep.subr.bf16.mxu1 %v4934_v50  ;;  %v1394_v33 = vmul.f32 %v5730_v60, %v1286_v14  ;;  %v5928_v35 = vmul.f32 %v6150_v19, %v1656_v25  ;;  %v5946_v14 = vld [vmem:[#allocation3 + $0x1c0] sm:$0xff]  }
 0x17b   : > { %4655 = vmatpush3.bf16.msra.mxu1 %v4934_v50  ;;  %v2834_v43 = vrot.slane %v2832_v48, 1  ;;  %v5935_v50 = vrot.slane %v2221_v22, 1  ;;  %v2216_v31 = vsel %vm2164_vm2, %v2211_v2, %v2215_v32  ;;  %v2836_v32 = vshrl.u32 %v5907_v18, 16 }
 0x17c   : > { %v1395_v62 = vmul.f32 %v5728_v54, %v1287_v28  ;;  %v5932_v40 = vmul.f32 %v6151_v51, %v1657_v42  ;;  %4656 = vmatprep.subr.bf16.mxu1 %v4935_v57 }
 0x17d   : > { %v1253_v15 = vpop.f32.mrb[52].mxu0  ;;  %v1599_v39 = vpop.f32.mrb[52].mxu1  ;;  %4617 = vmatpush3.bf16.msra.mxu0 %v4924_v16  ;;  %v5938_v47 = vsel %vm2164_vm2, %v2830_v21, %v2834_v43  ;;  %v4928_v16 = vld [vmem:[#allocation3 + $0x128] sm:$0xff]   ;;  %v2224_v36 = vsel %vm2164_vm2, %v2219_v30, %v5935_v50  ;;  %v4930_v30 = vld [vmem:[#allocation3 + $0x130] sm:$0xff]   ;;  %v2225_v21 = vshrl.u32 %v5913_v29, 16  ;;  %v2838_v19 = vor.u32 %v2836_v32, %v2834_v43 }
 0x17e   : > { %v5940_v60 = vpack.c.bf16 %v1395_v62, %v1394_v33  ;;  %v1781_v54 = vpack.c.bf16 %v5932_v40, %v5928_v35  ;;  %v1254_v63 = vadd.f32 %v5684_v49, %v1253_v15  ;;  %v1600_v61 = vadd.f32 %v5684_v49, %v1599_v39  ;;  %v4434_v12 = vpop.f32.mrb[53].mxu0  ;;  %v4456_v11 = vpop.f32.mrb[53].mxu1  ;;  %4618 = vmatprep.subr.bf16.mxu0 %v4926_v17  ;;  %v5954_v49 = vld [vmem:[%s6125_s3] ss:$0 sm:$0xff] }
 0x17f   : > { %v1256_v3 = vpop.f32.mrb[54].mxu0  ;;  %v1602_v25 = vpop.f32.mrb[54].mxu1  ;;  %4657 = vmatpush3.bf16.msra.mxu1 %v4935_v57  ;;  %v2231_v33 = vrot.slane %v2229_v6, 1 }
 0x180   : > { %v1288_v23 = vmax.f32 %v1254_v63, 0.0  ;;  %v1658_v10 = vmax.f32 %v1600_v61, 0.0  ;;  %v1257_v22 = vadd.f32 %v5954_v49, %v1256_v3  ;;  %v1603_v34 = vadd.f32 %v5954_v49, %v1602_v25  ;;  %v4457_v48 = vpop.f32.mrb[55].mxu1  ;;  %v4435_v28 = vpop.f32.mrb[55].mxu0  ;;  %4571 = vmatmul.mubr.bf16.gmra.mrb[88].mxu0 %v2216_v31  ;;  %4603 = vmatmul.mubr.bf16.gmra.mrb[104].mxu1 %v5940_v60  ;;  %v4932_v31 = vld [vmem:[#allocation3 + $0x138] sm:$0xff]  }
 0x181   : > { %4574 = vmatprep.mubr.bf16.mxu0 %v2224_v36  ;;  %4619 = vmatpush3.bf16.msra.mxu0 %v4926_v17  ;;  %v2840_v57 = vshll.u32 %v5940_v60, 16  ;;  %v6153_v17 = vld [vmem:[#allocation14_spill] sm:$0xff]  ;;  %v5970_v61 = vor.u32 %v2225_v21, %v5935_v50  ;;  %v2844_v32 = vshrl.u32 %v5940_v60, 16  ;;  %v4936_v21 = vld [vmem:[#allocation3 + $0x180] sm:$0xff]  }
 0x182   : > { %v1289_v42 = vmax.f32 %v1257_v22, 0.0  ;;  %v1659_v41 = vmax.f32 %v1603_v34, 0.0  ;;  %4620 = vmatprep.subr.bf16.mxu0 %v4928_v16  ;;  %4706 = vmatprep.subr.bf16.mxu1 %v5946_v14  ;;  %v1396_v51 = vmul.f32 %v5780_v37, %v1288_v23  ;;  %v5965_v15 = vmul.f32 %v6152_v55, %v1658_v10 }
 0x183   : > { %v2842_v62 = vrot.slane %v2840_v57, 1  ;;  %v2232_v6 = vsel %vm2164_vm2, %v5970_v61, %v2231_v33 }
 0x184   : > { %v1397_v18 = vmul.f32 %v5778_v38, %v1289_v42  ;;  %v1767_v39 = vmul.f32 %v6153_v17, %v1659_v41 }
 0x185   : > { %v1261_v2 = vpop.f32.mrb[56].mxu0  ;;  %v1607_v63 = vpop.f32.mrb[56].mxu1  ;;  %4621 = vmatpush3.bf16.msra.mxu0 %v4928_v16  ;;  %v5973_v12 = vsel %vm2164_vm2, %v2838_v19, %v2842_v62  ;;  %v2846_v33 = vor.u32 %v2844_v32, %v2842_v62 }
 0x186   : > { %v5975_v43 = vpack.c.bf16 %v1397_v18, %v1396_v51  ;;  %v1782_v37 = vpack.c.bf16 %v1767_v39, %v5965_v15  ;;  %v1262_v11 = vadd.f32 %v5954_v49, %v1261_v2  ;;  %v1608_v3 = vadd.f32 %v5954_v49, %v1607_v63  ;;  %v4438_v38 = vpop.f32.mrb[57].mxu0  ;;  %v4460_v25 = vpop.f32.mrb[57].mxu1  ;;  %4622 = vmatprep.subr.bf16.mxu0 %v4930_v30  ;;  %v4938_v2 = vld [vmem:[#allocation3 + $0x188] sm:$0xff]  }
 0x187   : > { %v1264_v36 = vpop.f32.mrb[58].mxu0  ;;  %v1610_v16 = vpop.f32.mrb[58].mxu1 }
 0x188   : > { %v1290_v23 = vmax.f32 %v1262_v11, 0.0  ;;  %v1660_v10 = vmax.f32 %v1608_v3, 0.0  ;;  %v1265_v22 = vadd.f32 %v5954_v49, %v1264_v36  ;;  %v1611_v34 = vadd.f32 %v5954_v49, %v1610_v16  ;;  %v4461_v48 = vpop.f32.mrb[59].mxu1  ;;  %v4439_v28 = vpop.f32.mrb[59].mxu0  ;;  %4575 = vmatmul.mubr.bf16.gmra.mrb[92].mxu0 %v2232_v6  ;;  %4606 = vmatprep.mubr.bf16.mxu1 %v5975_v43 }
 0x189   : > { %4623 = vmatpush3.bf16.msra.mxu0 %v4930_v30  ;;  %4626 = vmatprep.mubr.bf16.mxu0 %v1780_v53  ;;  %v2848_v57 = vshll.u32 %v5975_v43, 16 }
 0x18a   : > { %v1291_v42 = vmax.f32 %v1265_v22, 0.0  ;;  %v1661_v41 = vmax.f32 %v1611_v34, 0.0  ;;  %4624 = vmatprep.subr.bf16.mxu0 %v4932_v31  ;;  %v1398_v51 = vmul.f32 %v5797_v13, %v1290_v23  ;;  %v1768_v55 = vmul.f32 %v5700_v44, %v1660_v10  ;;  %v4940_v23 = vld [vmem:[#allocation3 + $0x190] sm:$0xff]  }
 0x18b   : > { %v2850_v19 = vrot.slane %v2848_v57, 1 }
 0x18c   : > { %v1399_v30 = vmul.f32 %v5795_v7, %v1291_v42  ;;  %v1769_v15 = vmul.f32 %v5698_v59, %v1661_v41  ;;  %v4939_v42 = vld [vmem:[#allocation3 + $0x1c8] sm:$0xff]  }
 0x18d   : > { %v1269_v8 = vpop.f32.mrb[60].mxu0  ;;  %v1615_v52 = vpop.f32.mrb[60].mxu1  ;;  %4625 = vmatpush3.bf16.msra.mxu0 %v4932_v31  ;;  %v5995_v53 = vsel %vm2164_vm2, %v2846_v33, %v2850_v19  ;;  %v2852_v31 = vshrl.u32 %v5975_v43, 16  ;;  %v4944_v33 = vld [vmem:[#allocation3 + $0x1a0] sm:$0xff]  }
 0x18e   : > { %v5997_v60 = vpack.c.bf16 %v1399_v30, %v1398_v51  ;;  %v1783_v18 = vpack.c.bf16 %v1769_v15, %v1768_v55  ;;  %v1270_v62 = vadd.f32 %v5954_v49, %v1269_v8  ;;  %v1616_v17 = vadd.f32 %v5954_v49, %v1615_v52  ;;  %v4442_v13 = vpop.f32.mrb[61].mxu0  ;;  %v4464_v39 = vpop.f32.mrb[61].mxu1  ;;  %4674 = vmatprep.subr.bf16.mxu0 %v4936_v21  ;;  %v4943_v8 = vld [vmem:[#allocation3 + $0x1d8] sm:$0xff]  }
 0x18f   : > { %v1272_v44 = vpop.f32.mrb[62].mxu0  ;;  %v1618_v7 = vpop.f32.mrb[62].mxu1  ;;  %v2854_v10 = vor.u32 %v2852_v31, %v2850_v19 }
 0x190   : > { %v1292_v59 = vmax.f32 %v1270_v62, 0.0  ;;  %v1662_v63 = vmax.f32 %v1616_v17, 0.0  ;;  %v1273_v11 = vadd.f32 %v5954_v49, %v1272_v44  ;;  %v1619_v3 = vadd.f32 %v5954_v49, %v1618_v7  ;;  %v4465_v38 = vpop.f32.mrb[63].mxu1  ;;  %4607 = vmatmul.mubr.bf16.gmra.mrb[108].mxu1 %v5997_v60  ;;  %4627 = vmatmul.mubr.bf16.vlgmr.msra.gmra.mrb[96].mxu0 %v1781_v54  ;;  %v4443_v25 = vpop.f32.mrb[63].mxu0  ;;  %v4948_v17 = vld [vmem:[#allocation3 + $0x1b0] sm:$0xff]  }
 0x191   : > { %4630 = vmatprep.mubr.bf16.mxu0 %v1782_v37  ;;  %4658 = vmatprep.mubr.bf16.mxu1 %v5858_v24  ;;  %v2856_v36 = vshll.u32 %v5997_v60, 16  ;;  %v2860_v31 = vshrl.u32 %v5997_v60, 16  ;;  %v4951_v60 = vld [vmem:[#allocation3 + $0x1f8] sm:$0xff]  }
 0x192   : > { %v1293_v16 = vmax.f32 %v1273_v11, 0.0  ;;  %v1663_v6 = vmax.f32 %v1619_v3, 0.0  ;;  %4675 = vmatpush3.bf16.msra.mxu0 %v4936_v21  ;;  %v1400_v34 = vmul.f32 %v5849_v20, %v1292_v59  ;;  %v1770_v35 = vmul.f32 %v5745_v45, %v1662_v63  ;;  %v4942_v20 = vld [vmem:[#allocation3 + $0x198] sm:$0xff]   ;;  %v4941_v21 = vld [vmem:[#allocation3 + $0x1d0] sm:$0xff]  }
 0x193   : > { %4676 = vmatprep.subr.bf16.mxu0 %v4938_v2  ;;  %v6010_v22 = vrot.slane %v2856_v36, 1  ;;  %v4950_v3 = vld [vmem:[#allocation3 + $0x1b8] sm:$0xff]  }
 0x194   : > { %v1401_v40 = vmul.f32 %v5847_v5, %v1293_v16  ;;  %v1771_v24 = vmul.f32 %v5743_v56, %v1663_v6  ;;  %v4949_v16 = vld [vmem:[#allocation3 + $0x1f0] sm:$0xff]   ;;  %v4952_v6 = vld [vmem:[#allocation3 + $0x200] sm:$0xff]  }
 0x195   : > { %v1623_v54 = vpop.f32.mrb[64].mxu1  ;;  %v6018_v43 = vsel %vm2164_vm2, %v2854_v10, %v6010_v22 }
 0x196   : > { %v1410_v37 = vpack.c.bf16 %v1401_v40, %v1400_v34  ;;  %v1784_v48 = vpack.c.bf16 %v1771_v24, %v1770_v35  ;;  %v1624_v28 = vadd.f32 %v5954_v49, %v1623_v54  ;;  %v4468_v32 = vpop.f32.mrb[65].mxu1  ;;  %4677 = vmatpush3.bf16.msra.mxu0 %v4938_v2  ;;  %v2862_v34 = vor.u32 %v2860_v31, %v6010_v22  ;;  %v3216_v54 = vld [vmem:[#allocation2 + $0x58] sm:$0xff]  ;;  %v1755_v22 = vpop.permute.xlu0 %1754 }
 0x197   : > { %v1626_v57 = vpop.f32.mrb[66].mxu1  ;;  %4678 = vmatprep.subr.bf16.mxu0 %v4940_v23  ;;  %v4963_v32 = vld [vmem:[#allocation2 + $0x18] sm:$0xff] }
 0x198   : > { %1420 = vst [vmem:[#allocation2 + $0xe0] sm:$0xff] %v1410_v37  ;;  %v1664_v45 = vmax.f32 %v1624_v28, 0.0  ;;  %v1627_v5 = vadd.f32 %v5954_v49, %v1626_v57  ;;  %v4469_v56 = vpop.f32.mrb[67].mxu1  ;;  %4631 = vmatmul.mubr.bf16.gmra.mrb[100].mxu0 %v1783_v18  ;;  %4659 = vmatmul.mubr.bf16.vlgmr.msra.gmra.mrb[112].mxu1 %v5876_v58  ;;  %v4953_v37 = vld [vmem:[#allocation3 + $0x208] sm:$0xff]   ;;  %v3217_v28 = vld [vmem:[#allocation2 + $0x60] sm:$0xff] }
 0x199   : > { %4634 = vmatprep.mubr.bf16.mxu0 %v1784_v48  ;;  %4662 = vmatprep.mubr.bf16.mxu1 %v5905_v0  ;;  %v4962_v48 = vld [vmem:[#allocation2 + $0x10] sm:$0xff]  ;;  %v3218_v57 = vld [vmem:[#allocation2 + $0x68] sm:$0xff] }
 0x19a   : > { %v1665_v41 = vmax.f32 %v1627_v5, 0.0  ;;  %4707 = vmatpush3.bf16.msra.mxu1 %v5946_v14  ;;  %4679 = vmatpush3.bf16.msra.mxu0 %v4940_v23  ;;  %v1772_v19 = vmul.f32 %v5762_v1, %v1664_v45  ;;  %v4946_v14 = vld [vmem:[#allocation3 + $0x1a8] sm:$0xff]   ;;  %v4945_v1 = vld [vmem:[#allocation3 + $0x1e0] sm:$0xff]   ;;  %v3219_v5 = vld [vmem:[#allocation2 + $0x70] sm:$0xff] }
 0x19b   : > { %4708 = vmatprep.subr.bf16.mxu1 %v4939_v42  ;;  %4680 = vmatprep.subr.bf16.mxu0 %v4942_v20  ;;  %v4964_v45 = vld [vmem:[#allocation2 + $0x20] sm:$0xff]  ;;  %v4965_v56 = vld [vmem:[#allocation2 + $0x28] sm:$0xff] }
 0x19c   : > { %v1773_v51 = vmul.f32 %v5760_v46, %v1665_v41  ;;  %v3220_v41 = vld [vmem:[#allocation2 + $0x78] sm:$0xff] }
 0x19d   : > { %v1631_v55 = vpop.f32.mrb[68].mxu1 }
 0x19e   : > { %v1785_v30 = vpack.c.bf16 %v1773_v51, %v1772_v19  ;;  %v1632_v15 = vadd.f32 %v5954_v49, %v1631_v55  ;;  %v4472_v58 = vpop.f32.mrb[69].mxu1  ;;  %4709 = vmatpush3.bf16.msra.mxu1 %v4939_v42  ;;  %4681 = vmatpush3.bf16.msra.mxu0 %v4942_v20  ;;  %v4954_v42 = vld [vmem:[#allocation3 + $0x210] sm:$0xff]   ;;  %v4955_v20 = vld [vmem:[#allocation3 + $0x218] sm:$0xff]   ;;  %v4957_v55 = vld [vmem:[#allocation3 + $0x228] sm:$0xff]  }
 0x19f   : > { %v1634_v0 = vpop.f32.mrb[70].mxu1  ;;  %4710 = vmatprep.subr.bf16.mxu1 %v4941_v21  ;;  %4682 = vmatprep.subr.bf16.mxu0 %v4944_v33  ;;  %v2782_v44 = vld [vmem:[#allocation2 + $0xe0] sm:$0x1]  ;;  %v3403_v51 = vld [vmem:[#allocation2 + $0x10] sm:$0xff] }
 0x1a0   : > { %v1666_v52 = vmax.f32 %v1632_v15, 0.0  ;;  %v1635_v18 = vadd.f32 %v5954_v49, %v1634_v0  ;;  %v4473_v62 = vpop.f32.mrb[71].mxu1  ;;  %4635 = vmatmul.mubr.bf16.gmra.mrb[104].mxu0 %v1785_v30  ;;  %4663 = vmatmul.mubr.bf16.gmra.mrb[116].mxu1 %v5938_v47  ;;  %v2864_v11 = vshll.u32 %v2782_v44, 16  ;;  %v4966_v30 = vld [vmem:[#allocation2 + $0x30] sm:$0xff]  ;;  %v3221_v15 = vld [vmem:[#allocation2 + $0x80] sm:$0xff] }
 0x1a1   : > { %4666 = vmatprep.mubr.bf16.mxu1 %v5973_v12  ;;  %v4947_v12 = vld [vmem:[#allocation3 + $0x1e8] sm:$0xff]   ;;  %v3223_v44 = vld [vmem:[#allocation2 + $0x90] sm:$0xff] }
 0x1a2   : > { %v1667_v46 = vmax.f32 %v1635_v18, 0.0  ;;  %4711 = vmatpush3.bf16.msra.mxu1 %v4941_v21  ;;  %4683 = vmatpush3.bf16.msra.mxu0 %v4944_v33  ;;  %v1774_v13 = vmul.f32 %v5816_v27, %v1666_v52  ;;  %v2866_v36 = vrot.slane %v2864_v11, 1  ;;  %v3402_v21 = vld [vmem:[#allocation2 + $0x8] sm:$0xff]  ;;  %v4956_v33 = vld [vmem:[#allocation3 + $0x220] sm:$0xff]   ;;  %v4958_v52 = vld [vmem:[#allocation3 + $0x230] sm:$0xff]  }
 0x1a3   : > { %4712 = vmatprep.subr.bf16.mxu1 %v4943_v8  ;;  %4684 = vmatprep.subr.bf16.mxu0 %v4946_v14  ;;  %v3431_v19 = vshll.u32 %v3402_v21, 16  ;;  %v3429_v58 = vshrl.u32 %v3402_v21, 16 }
 0x1a4   : > { %v1775_v39 = vmul.f32 %v5814_v26, %v1667_v46  ;;  %v2867_v24 = vsel %vm2164_vm2, %v2862_v34, %v2866_v36  ;;  %v3404_v46 = vld [vmem:[#allocation2 + $0x18] sm:$0xff] }
 0x1a5   : > { %v1639_v7 = vpop.f32.mrb[72].mxu1  ;;  %v3433_v0 = vrot.slane %v3431_v19, 1 }
 0x1a6   : > { %v1786_v2 = vpack.c.bf16 %v1775_v39, %v1774_v13  ;;  %v1640_v59 = vadd.f32 %v5954_v49, %v1639_v7  ;;  %v4476_v63 = vpop.f32.mrb[73].mxu1  ;;  %4713 = vmatpush3.bf16.msra.mxu1 %v4943_v8  ;;  %4685 = vmatpush3.bf16.msra.mxu0 %v4946_v14  ;;  %v3436_v8 = vshll.u32 %v3403_v51, 16  ;;  %v3222_v14 = vld [vmem:[#allocation2 + $0x88] sm:$0xff]  ;;  %v4959_v13 = vld [vmem:[#allocation3 + $0x238] sm:$0xff]   ;;  %v3444_v39 = vshll.u32 %v3404_v46, 16 }
 0x1a7   : > { %v1642_v47 = vpop.f32.mrb[74].mxu1  ;;  %4714 = vmatprep.subr.bf16.mxu1 %v4945_v1  ;;  %4686 = vmatprep.subr.bf16.mxu0 %v4948_v17  ;;  %v3434_v18 = vor.u32 %v3433_v0, %v3429_v58  ;;  %v3406_v63 = vld [vmem:[#allocation2 + $0x28] sm:$0xff] }
 0x1a8   : > { %v1668_v38 = vmax.f32 %v1640_v59, 0.0  ;;  %v1643_v25 = vadd.f32 %v5954_v49, %v1642_v47  ;;  %v4477_v27 = vpop.f32.mrb[75].mxu1  ;;  %4638 = vmatprep.mubr.bf16.mxu0 %v1786_v2  ;;  %4667 = vmatmul.mubr.bf16.gmra.mrb[120].mxu1 %v5995_v53  ;;  %v3438_v62 = vrot.slane %v3436_v8, 1  ;;  %v3446_v2 = vrot.slane %v3444_v39, 1 }
 0x1a9   : > { %4670 = vmatprep.mubr.bf16.mxu1 %v6018_v43  ;;  %v3440_v59 = vshrl.u32 %v3403_v51, 16  ;;  %v3448_v47 = vshrl.u32 %v3404_v46, 16 }
 0x1aa   : > { %v1669_v26 = vmax.f32 %v1643_v25, 0.0  ;;  %4715 = vmatpush3.bf16.msra.mxu1 %v4945_v1  ;;  %4687 = vmatpush3.bf16.msra.mxu0 %v4948_v17  ;;  %v1776_v23 = vmul.f32 %v5830_v9, %v1668_v38  ;;  %v4961_v9 = vld [vmem:[#allocation2 + $0x8] sm:$0xff]  ;;  %v3405_v1 = vld [vmem:[#allocation2 + $0x20] sm:$0xff]  ;;  %v3439_v7 = vsel %vm2164_vm2, %v3434_v18, %v3438_v62  ;;  %v3460_v25 = vshll.u32 %v3406_v63, 16 }
 0x1ab   : > { %4716 = vmatprep.subr.bf16.mxu1 %v4947_v12  ;;  %4688 = vmatprep.subr.bf16.mxu0 %v4950_v3  ;;  %v3037_v17 = vld [vmem:[#allocation2 + $0x40] sm:$0xff]  ;;  %v3442_v11 = vor.u32 %v3440_v59, %v3438_v62  ;;  %v3450_v38 = vor.u32 %v3448_v47, %v3446_v2 }
 0x1ac   : > { %v1777_v49 = vmul.f32 %v5828_v4, %v1669_v26  ;;  %v1760_v4 = vpop.permute.xlu1 %1759  ;;  %v3462_v36 = vrot.slane %v3460_v25, 1  ;;  %v3488_v22 = vshrl.u32 %v3037_v17, 16 }
 0x1ad   : > { %v1647_v10 = vpop.f32.mrb[76].mxu1  ;;  %v3447_v27 = vsel %vm2164_vm2, %v3442_v11, %v3446_v2 }
 0x1ae   : > { %v1787_v53 = vpack.c.bf16 %v1777_v49, %v1776_v23  ;;  %v4480_v35 = vpop.f32.mrb[77].mxu1  ;;  %4717 = vmatpush3.bf16.msra.mxu1 %v4947_v12  ;;  %4689 = vmatpush3.bf16.msra.mxu0 %v4950_v3  ;;  %v3407_v3 = vld [vmem:[#allocation2 + $0x30] sm:$0xff] }
 0x1af   : > { %v1650_v40 = vpop.f32.mrb[78].mxu1  ;;  %4718 = vmatprep.subr.bf16.mxu1 %v4949_v16  ;;  %4738 = vmatprep.subr.bf16.mxu0 %v4952_v6  ;;  %v3468_v31 = vshll.u32 %v3407_v3, 16  ;;  %v3484_v35 = vshll.u32 %v3037_v17, 16 }
 0x1b0   : > { %4639 = vmatmul.mubr.bf16.gmra.mrb[108].mxu0 %v1787_v53  ;;  %4671 = vmatmul.mubr.bf16.gmra.mrb[124].mxu1 %v2867_v24  ;;  %v4481_v43 = vpop.f32.mrb[79].mxu1  ;;  %v3472_v40 = vshrl.u32 %v3407_v3, 16 }
 0x1b1   : > { %4690 = vmatprep.mubr.bf16.mxu0 %v4961_v9  ;;  %4722 = vmatprep.mubr.bf16.mxu1 %v3216_v54  ;;  %v3470_v23 = vrot.slane %v3468_v31, 1  ;;  %v3410_v54 = vld [vmem:[#allocation2 + $0x48] sm:$0x1] }
 0x1b2   : > { %4719 = vmatpush3.bf16.msra.mxu1 %v4949_v16  ;;  %v3456_v16 = vshrl.u32 %v3405_v1, 16  ;;  %v3492_v9 = vshll.u32 %v3410_v54, 16 }
 0x1b3   : > { %4720 = vmatprep.subr.bf16.mxu1 %v4951_v60  ;;  %v3474_v24 = vor.u32 %v3472_v40, %v3470_v23 }
 0x1b5   : > { %v3479_v43 = vsel %vm2164_vm2, %v3474_v24, %v5935_v50 }
 0x1b6   : > { %4721 = vmatpush3.bf16.msra.mxu1 %v4951_v60  ;;  %v3486_v60 = vrot.slane %v3484_v35, 1 }
 0x1b8   : > { %4691 = vmatmul.mubr.bf16.vlgmr.msra.gmra.mrb[112].mxu0 %v4962_v48  ;;  %v3487_v4 = vsel %vm2164_vm2, %v5970_v61, %v3486_v60  ;;  %v3494_v48 = vrot.slane %v3492_v9, 1 }
 0x1b9   : > { %4723 = vmatmul.mubr.bf16.vlgmr.msra.gmra.mrb[128].mxu1 %v3217_v28  ;;  %4694 = vmatprep.mubr.bf16.mxu0 %v4963_v32 }
 0x1ba   : > { %4726 = vmatprep.mubr.bf16.mxu1 %v3218_v57  ;;  %4739 = vmatpush3.bf16.msra.mxu0 %v4952_v6  ;;  %v3464_v6 = vshrl.u32 %v3406_v63, 16 }
 0x1bb   : > { %4740 = vmatprep.subr.bf16.mxu0 %v4953_v37 }
 0x1bc   : > { %v3466_v10 = vor.u32 %v3464_v6, %v3462_v36 }
 0x1be   : > { %4741 = vmatpush3.bf16.msra.mxu0 %v4953_v37  ;;  %v3471_v53 = vsel %vm2164_vm2, %v3466_v10, %v3470_v23  ;;  %v3490_v37 = vor.u32 %v3488_v22, %v3486_v60 }
 0x1bf   : > { %4742 = vmatprep.subr.bf16.mxu0 %v4954_v42 }
 0x1c0   : > { %4695 = vmatmul.mubr.bf16.gmra.mrb[116].mxu0 %v4964_v45  ;;  %v3495_v28 = vsel %vm2164_vm2, %v3490_v37, %v3494_v48 }
 0x1c1   : > { %4727 = vmatmul.mubr.bf16.gmra.mrb[132].mxu1 %v3219_v5  ;;  %4698 = vmatprep.mubr.bf16.mxu0 %v4965_v56 }
 0x1c2   : > { %4730 = vmatprep.mubr.bf16.mxu1 %v3220_v41  ;;  %4743 = vmatpush3.bf16.msra.mxu0 %v4954_v42 }
 0x1c3   : > { %4744 = vmatprep.subr.bf16.mxu0 %v4955_v20 }
 0x1c6   : > { %4745 = vmatpush3.bf16.msra.mxu0 %v4955_v20 }
 0x1c7   : > { %4746 = vmatprep.subr.bf16.mxu0 %v4956_v33 }
 0x1c8   : > { %4699 = vmatmul.mubr.bf16.gmra.mrb[120].mxu0 %v4966_v30 }
 0x1c9   : > { %4731 = vmatmul.mubr.bf16.gmra.mrb[136].mxu1 %v3221_v15  ;;  %4702 = vmatprep.mubr.bf16.mxu0 %v5913_v29  ;;  %v3452_v29 = vshll.u32 %v3405_v1, 16 }
 0x1ca   : > { %4734 = vmatprep.mubr.bf16.mxu1 %v3222_v14  ;;  %4747 = vmatpush3.bf16.msra.mxu0 %v4956_v33 }
 0x1cb   : > { %4748 = vmatprep.subr.bf16.mxu0 %v4957_v55  ;;  %v3454_v12 = vrot.slane %v3452_v29, 1 }
 0x1cd   : > { %v3455_v26 = vsel %vm2164_vm2, %v3450_v38, %v3454_v12  ;;  %v3458_v49 = vor.u32 %v3456_v16, %v3454_v12 }
 0x1ce   : > { %4749 = vmatpush3.bf16.msra.mxu0 %v4957_v55 }
 0x1cf   : > { %4750 = vmatprep.subr.bf16.mxu0 %v4958_v52  ;;  %v3463_v34 = vsel %vm2164_vm2, %v3458_v49, %v3462_v36 }
 0x1d0   : > { %4703 = vmatmul.mubr.bf16.gmra.mrb[124].mxu0 %v3037_v17 }
 0x1d1   : > { %4735 = vmatmul.mubr.bf16.gmra.mrb[140].mxu1 %v3223_v44  ;;  %4754 = vmatprep.mubr.bf16.mxu0 %v3439_v7 }
 0x1d2   : > { %4751 = vmatpush3.bf16.msra.mxu0 %v4958_v52 }
 0x1d3   : > { %4752 = vmatprep.subr.bf16.mxu0 %v4959_v13 }
 0x1d6   : > { %4753 = vmatpush3.bf16.msra.mxu0 %v4959_v13 }
 0x1d9   : > { %4755 = vmatmul.mubr.bf16.vlgmr.msra.gmra.mrb[128].mxu0 %v3447_v27 }
 0x1da   : > { %4758 = vmatprep.mubr.bf16.mxu0 %v3455_v26 }
 0x1e1   : > { %4759 = vmatmul.mubr.bf16.gmra.mrb[132].mxu0 %v3463_v34 }
 0x1e2   : > { %4762 = vmatprep.mubr.bf16.mxu0 %v3471_v53 }
 0x1e9   : > { %4763 = vmatmul.mubr.bf16.gmra.mrb[136].mxu0 %v3479_v43 }
 0x1ea   : > { %4766 = vmatprep.mubr.bf16.mxu0 %v3487_v4 }
 0x1f1   : > { %4767 = vmatmul.mubr.bf16.gmra.mrb[140].mxu0 %v3495_v28 }
 0x1fb   : > { %v4532_v32 = vpop.f32.mrb[80].mxu1 }
 0x1fc   : > { %v2075_v57 = vpop.f32.mrb[81].mxu1 }
 0x1fd   : > { %v4533_v42 = vpop.f32.mrb[82].mxu1 }
 0x1fe   : > { %v2078_v20 = vpop.f32.mrb[83].mxu1 }
 0x20b   : > { %v4500_v45 = vpop.f32.mrb[64].mxu0 }
 0x20c   : > { %v4536_v5 = vpop.f32.mrb[84].mxu1  ;;  %v2084_v56 = vadd.f32 %v4532_v32, %v4500_v45  ;;  %v1930_v50 = vpop.f32.mrb[65].mxu0 }
 0x20d   : > { %v2091_v41 = vpop.f32.mrb[85].mxu1  ;;  %v2076_v21 = vadd.f32 %v2075_v57, %v1930_v50  ;;  %v4501_v33 = vpop.f32.mrb[66].mxu0 }
 0x20e   : > { %v4537_v19 = vpop.f32.mrb[86].mxu1  ;;  %v1933_v61 = vpop.f32.mrb[67].mxu0 }
 0x20f   : > { %v2094_v51 = vpop.f32.mrb[87].mxu1 }
 0x21b   : > { %v4504_v55 = vpop.f32.mrb[68].mxu0 }
 0x21c   : > { %v4540_v30 = vpop.f32.mrb[88].mxu1  ;;  %v2100_v15 = vadd.f32 %v4536_v5, %v4504_v55  ;;  %v1946_v58 = vpop.f32.mrb[69].mxu0 }
 0x21d   : > { %v2107_v0 = vpop.f32.mrb[89].mxu1  ;;  %v2092_v8 = vadd.f32 %v2091_v41, %v1946_v58  ;;  %v4505_v14 = vpop.f32.mrb[70].mxu0 }
 0x21e   : > { %v4541_v52 = vpop.f32.mrb[90].mxu1  ;;  %v1949_v18 = vpop.f32.mrb[71].mxu0 }
 0x21f   : > { %v2110_v62 = vpop.f32.mrb[91].mxu1 }
 0x225   : > { %v4544_v46 = vpop.f32.mrb[92].mxu1 }
 0x226   : > { %v2123_v1 = vpop.f32.mrb[93].mxu1 }
 0x227   : > { %v4545_v17 = vpop.f32.mrb[94].mxu1 }
 0x228   : > { %v2126_v13 = vpop.f32.mrb[95].mxu1 }
 0x22b   : > { %v4508_v39 = vpop.f32.mrb[72].mxu0 }
 0x22c   : > { %v2116_v44 = vadd.f32 %v4540_v30, %v4508_v39  ;;  %v1962_v7 = vpop.f32.mrb[73].mxu0 }
 0x22d   : > { %v2108_v29 = vadd.f32 %v2107_v0, %v1962_v7  ;;  %v4509_v2 = vpop.f32.mrb[74].mxu0 }
 0x22e   : > { %v1965_v59 = vpop.f32.mrb[75].mxu0 }
 0x233   : > { %v4596_v63 = vpop.f32.mrb[96].mxu1 }
 0x234   : > { %v2509_v47 = vpop.f32.mrb[97].mxu1 }
 0x235   : > { %v4597_v12 = vpop.f32.mrb[98].mxu1 }
 0x236   : > { %v2512_v11 = vpop.f32.mrb[99].mxu1 }
 0x23b   : > { %v4512_v3 = vpop.f32.mrb[76].mxu0 }
 0x23c   : > { %v2132_v38 = vadd.f32 %v4544_v46, %v4512_v3  ;;  %v1978_v25 = vpop.f32.mrb[77].mxu0 }
 0x23d   : > { %v2124_v27 = vadd.f32 %v2123_v1, %v1978_v25  ;;  %v4513_v26 = vpop.f32.mrb[78].mxu0 }
 0x23e   : > { %v1981_v31 = vpop.f32.mrb[79].mxu0 }
 0x243   : > { %v4564_v36 = vpop.f32.mrb[80].mxu0  ;;  %v4600_v16 = vpop.f32.mrb[100].mxu1 }
 0x244   : > { %v2388_v6 = vadd.f32 %v4564_v36, %v2084_v56  ;;  %v2323_v23 = vpop.f32.mrb[81].mxu0  ;;  %v2525_v49 = vpop.f32.mrb[101].mxu1 }
 0x245   : > { %v2386_v10 = vadd.f32 %v2323_v23, %v2076_v21  ;;  %v4565_v34 = vpop.f32.mrb[82].mxu0  ;;  %v4601_v53 = vpop.f32.mrb[102].mxu1 }
 0x246   : > { %v2326_v35 = vpop.f32.mrb[83].mxu0  ;;  %v2528_v40 = vpop.f32.mrb[103].mxu1  ;;  %v2574_v24 = vadd.f32 %v4596_v63, %v2388_v6 }
 0x247   : > { %v2572_v60 = vadd.f32 %v2509_v47, %v2386_v10 }
 0x24b   : > { %v4568_v54 = vpop.f32.mrb[84].mxu0 }
 0x24c   : > { %v2392_v43 = vadd.f32 %v4568_v54, %v2100_v15  ;;  %v2339_v9 = vpop.f32.mrb[85].mxu0 }
 0x24d   : > { %v2390_v4 = vadd.f32 %v2339_v9, %v2092_v8  ;;  %v4569_v22 = vpop.f32.mrb[86].mxu0 }
 0x24e   : > { %v2342_v37 = vpop.f32.mrb[87].mxu0  ;;  %v2578_v48 = vadd.f32 %v4600_v16, %v2392_v43 }
 0x24f   : > { %v2576_v28 = vadd.f32 %v2525_v49, %v2390_v4 }
 0x253   : > { %v4572_v32 = vpop.f32.mrb[88].mxu0  ;;  %v4604_v57 = vpop.f32.mrb[104].mxu1 }
 0x254   : > { %v2396_v42 = vadd.f32 %v4572_v32, %v2116_v44  ;;  %v2355_v20 = vpop.f32.mrb[89].mxu0  ;;  %v2541_v45 = vpop.f32.mrb[105].mxu1 }
 0x255   : > { %v2394_v5 = vadd.f32 %v2355_v20, %v2108_v29  ;;  %v4573_v56 = vpop.f32.mrb[90].mxu0  ;;  %v4605_v50 = vpop.f32.mrb[106].mxu1 }
 0x256   : > { %v2582_v41 = vadd.f32 %v4604_v57, %v2396_v42  ;;  %v2358_v21 = vpop.f32.mrb[91].mxu0  ;;  %v2544_v33 = vpop.f32.mrb[107].mxu1 }
 0x257   : > { %v2580_v19 = vadd.f32 %v2541_v45, %v2394_v5 }
 0x25b   : > { %v4576_v61 = vpop.f32.mrb[92].mxu0 }
 0x25c   : > { %v2400_v51 = vadd.f32 %v4576_v61, %v2132_v38  ;;  %v2371_v55 = vpop.f32.mrb[93].mxu0 }
 0x25d   : > { %v2398_v30 = vadd.f32 %v2371_v55, %v2124_v27  ;;  %v4577_v15 = vpop.f32.mrb[94].mxu0 }
 0x25e   : > { %v2374_v58 = vpop.f32.mrb[95].mxu0 }
 0x263   : > { %v4608_v0 = vpop.f32.mrb[108].mxu1  ;;  %v4628_v8 = vpop.f32.mrb[96].mxu0 }
 0x264   : > { %v2586_v14 = vadd.f32 %v4608_v0, %v2400_v51  ;;  %v2760_v52 = vadd.f32 %v4628_v8, %v2574_v24  ;;  %v2557_v18 = vpop.f32.mrb[109].mxu1  ;;  %v2695_v62 = vpop.f32.mrb[97].mxu0 }
 0x265   : > { %v2584_v46 = vadd.f32 %v2557_v18, %v2398_v30  ;;  %v2758_v1 = vadd.f32 %v2695_v62, %v2572_v60  ;;  %v4609_v17 = vpop.f32.mrb[110].mxu1  ;;  %v4629_v13 = vpop.f32.mrb[98].mxu0 }
 0x266   : > { %v2560_v39 = vpop.f32.mrb[111].mxu1  ;;  %v2698_v44 = vpop.f32.mrb[99].mxu0 }
 0x26b   : > { %v4632_v7 = vpop.f32.mrb[100].mxu0  ;;  %v4660_v29 = vpop.f32.mrb[112].mxu1 }
 0x26c   : > { %v2764_v2 = vadd.f32 %v4632_v7, %v2578_v48  ;;  %v3023_v59 = vadd.f32 %v4660_v29, %v2760_v52  ;;  %v2711_v63 = vpop.f32.mrb[101].mxu0  ;;  %v2958_v47 = vpop.f32.mrb[113].mxu1 }
 0x26d   : > { %v2762_v12 = vadd.f32 %v2711_v63, %v2576_v28  ;;  %v3021_v11 = vadd.f32 %v2958_v47, %v2758_v1  ;;  %v4633_v3 = vpop.f32.mrb[102].mxu0  ;;  %v4661_v38 = vpop.f32.mrb[114].mxu1 }
 0x26e   : > { %v2714_v25 = vpop.f32.mrb[103].mxu0  ;;  %v2961_v27 = vpop.f32.mrb[115].mxu1 }
 0x273   : > { %v4636_v26 = vpop.f32.mrb[104].mxu0  ;;  %v4664_v31 = vpop.f32.mrb[116].mxu1 }
 0x274   : > { %v2768_v36 = vadd.f32 %v4636_v26, %v2582_v41  ;;  %v3027_v16 = vadd.f32 %v4664_v31, %v2764_v2  ;;  %v2727_v6 = vpop.f32.mrb[105].mxu0  ;;  %v2974_v23 = vpop.f32.mrb[117].mxu1 }
 0x275   : > { %v2766_v49 = vadd.f32 %v2727_v6, %v2580_v19  ;;  %v3025_v10 = vadd.f32 %v2974_v23, %v2762_v12  ;;  %v4637_v34 = vpop.f32.mrb[106].mxu0  ;;  %v4665_v53 = vpop.f32.mrb[118].mxu1 }
 0x276   : > { %v2730_v35 = vpop.f32.mrb[107].mxu0  ;;  %v2977_v40 = vpop.f32.mrb[119].mxu1 }
 0x27b   : > { %v4668_v24 = vpop.f32.mrb[120].mxu1 }
 0x27c   : > { %v3031_v60 = vadd.f32 %v4668_v24, %v2768_v36  ;;  %v2990_v54 = vpop.f32.mrb[121].mxu1 }
 0x27d   : > { %v3029_v43 = vadd.f32 %v2990_v54, %v2766_v49  ;;  %v4669_v9 = vpop.f32.mrb[122].mxu1 }
 0x27e   : > { %v2993_v4 = vpop.f32.mrb[123].mxu1 }
 0x283   : > { %v4640_v22 = vpop.f32.mrb[108].mxu0  ;;  %v4672_v37 = vpop.f32.mrb[124].mxu1 }
 0x284   : > { %v2772_v48 = vadd.f32 %v4640_v22, %v2586_v14  ;;  %v2743_v28 = vpop.f32.mrb[109].mxu0  ;;  %v3006_v32 = vpop.f32.mrb[125].mxu1 }
 0x285   : > { %v2770_v57 = vadd.f32 %v2743_v28, %v2584_v46  ;;  %v4641_v42 = vpop.f32.mrb[110].mxu0  ;;  %v4673_v20 = vpop.f32.mrb[126].mxu1 }
 0x286   : > { %v3035_v45 = vadd.f32 %v4672_v37, %v2772_v48  ;;  %v2746_v5 = vpop.f32.mrb[111].mxu0  ;;  %v3009_v56 = vpop.f32.mrb[127].mxu1 }
 0x287   : > { %v3033_v50 = vadd.f32 %v3006_v32, %v2770_v57 }
 0x28b   : > { %v4692_v41 = vpop.f32.mrb[112].mxu0 }
 0x28c   : > { %v3202_v21 = vadd.f32 %v4692_v41, %v3023_v59  ;;  %v4724_v33 = vpop.f32.mrb[128].mxu1  ;;  %v3137_v19 = vpop.f32.mrb[113].mxu0 }
 0x28d   : > { %v3200_v61 = vadd.f32 %v3137_v19, %v3021_v11  ;;  %v3323_v51 = vpop.f32.mrb[129].mxu1  ;;  %v4693_v55 = vpop.f32.mrb[114].mxu0 }
 0x28e   : > { %v3388_v30 = vadd.f32 %v4724_v33, %v3202_v21  ;;  %v4725_v15 = vpop.f32.mrb[130].mxu1  ;;  %v3140_v58 = vpop.f32.mrb[115].mxu0 }
 0x28f   : > { %v3386_v0 = vadd.f32 %v3323_v51, %v3200_v61  ;;  %v3326_v8 = vpop.f32.mrb[131].mxu1 }
 0x293   : > { %v4696_v14 = vpop.f32.mrb[116].mxu0 }
 0x294   : > { %v3206_v52 = vadd.f32 %v4696_v14, %v3027_v16  ;;  %v4728_v18 = vpop.f32.mrb[132].mxu1  ;;  %v3153_v62 = vpop.f32.mrb[117].mxu0 }
 0x295   : > { %v3204_v46 = vadd.f32 %v3153_v62, %v3025_v10  ;;  %v3339_v1 = vpop.f32.mrb[133].mxu1  ;;  %v4697_v17 = vpop.f32.mrb[118].mxu0 }
 0x296   : > { %v3392_v13 = vadd.f32 %v4728_v18, %v3206_v52  ;;  %v4729_v39 = vpop.f32.mrb[134].mxu1  ;;  %v3156_v44 = vpop.f32.mrb[119].mxu0 }
 0x297   : > { %v3390_v7 = vadd.f32 %v3339_v1, %v3204_v46  ;;  %v3342_v29 = vpop.f32.mrb[135].mxu1 }
 0x29b   : > { %v4700_v2 = vpop.f32.mrb[120].mxu0 }
 0x29c   : > { %v3210_v59 = vadd.f32 %v4700_v2, %v3031_v60  ;;  %v4732_v63 = vpop.f32.mrb[136].mxu1  ;;  %v3169_v47 = vpop.f32.mrb[121].mxu0 }
 0x29d   : > { %v3208_v12 = vadd.f32 %v3169_v47, %v3029_v43  ;;  %v3355_v11 = vpop.f32.mrb[137].mxu1  ;;  %v4701_v3 = vpop.f32.mrb[122].mxu0  ;;  %v4116_v43 = vld [vmem:[%s6127_s5] ss:$0 sm:$0xff] }
 0x29e   : > { %v3396_v38 = vadd.f32 %v4732_v63, %v3210_v59  ;;  %v4733_v25 = vpop.f32.mrb[138].mxu1  ;;  %v3172_v27 = vpop.f32.mrb[123].mxu0 }
 0x29f   : > { %v3394_v26 = vadd.f32 %v3355_v11, %v3208_v12  ;;  %v3358_v31 = vpop.f32.mrb[139].mxu1 }
 0x2a3   : > { %v4704_v36 = vpop.f32.mrb[124].mxu0 }
 0x2a4   : > { %v3214_v16 = vadd.f32 %v4704_v36, %v3035_v45  ;;  %v4736_v6 = vpop.f32.mrb[140].mxu1  ;;  %v3185_v23 = vpop.f32.mrb[125].mxu0 }
 0x2a5   : > { %v3212_v49 = vadd.f32 %v3185_v23, %v3033_v50  ;;  %v3371_v10 = vpop.f32.mrb[141].mxu1  ;;  %v4705_v34 = vpop.f32.mrb[126].mxu0 }
 0x2a6   : > { %v3400_v53 = vadd.f32 %v4736_v6, %v3214_v16  ;;  %v4737_v35 = vpop.f32.mrb[142].mxu1  ;;  %v3188_v40 = vpop.f32.mrb[127].mxu0 }
 0x2a7   : > { %v3398_v24 = vadd.f32 %v3371_v10, %v3212_v49  ;;  %v3374_v60 = vpop.f32.mrb[143].mxu1 }
 0x2ac   : > { %v4756_v54 = vpop.f32.mrb[128].mxu0 }
 0x2ad   : > { %v3651_v9 = vadd.f32 %v4756_v54, %v3388_v30  ;;  %v3586_v4 = vpop.f32.mrb[129].mxu0 }
 0x2ae   : > { %v3649_v22 = vadd.f32 %v3586_v4, %v3386_v0  ;;  %v4757_v37 = vpop.f32.mrb[130].mxu0 }
 0x2af   : > { %v3674_v48 = vadd.f32 %v4116_v43, %v3651_v9  ;;  %v3589_v28 = vpop.f32.mrb[131].mxu0 }
 0x2b0   : > { %v3672_v32 = vadd.f32 %v4116_v43, %v3649_v22 }
 0x2b1   : > { %v3690_v57 = vmax.f32 %v3674_v48, 0.0 }
 0x2b2   : > { %v3688_v42 = vmax.f32 %v3672_v32, 0.0 }
 0x2b4   : > { %v4126_v20 = vpack.c.bf16 %v3690_v57, %v3688_v42  ;;  %v4760_v45 = vpop.f32.mrb[132].mxu0 }
 0x2b5   : > { %v3655_v5 = vadd.f32 %v4760_v45, %v3392_v13  ;;  %v3602_v56 = vpop.f32.mrb[133].mxu0 }
 0x2b6   : > { %4127 = vst [vmem:[%s6059_s27] sm:$0xff] %v4126_v20   ;;  %v3653_v50 = vadd.f32 %v3602_v56, %v3390_v7  ;;  %v4761_v41 = vpop.f32.mrb[134].mxu0 }
 0x2b7   : > { %v3678_v21 = vadd.f32 %v4116_v43, %v3655_v5  ;;  %v3605_v33 = vpop.f32.mrb[135].mxu0 }
 0x2b8   : > { %v3676_v19 = vadd.f32 %v4116_v43, %v3653_v50 }
 0x2b9   : > { %v3694_v61 = vmax.f32 %v3678_v21, 0.0 }
 0x2ba   : > { %v3692_v51 = vmax.f32 %v3676_v19, 0.0 }
 0x2bc   : > { %v4131_v55 = vpack.c.bf16 %v3694_v61, %v3692_v51  ;;  %v4764_v30 = vpop.f32.mrb[136].mxu0 }
 0x2bd   : > { %v3659_v15 = vadd.f32 %v4764_v30, %v3396_v38  ;;  %v3618_v58 = vpop.f32.mrb[137].mxu0 }
 0x2be   : > { %4143 = vst [vmem:[%s6059_s27 + $0x8] sm:$0xff] %v4131_v55   ;;  %v3657_v0 = vadd.f32 %v3618_v58, %v3394_v26  ;;  %v4765_v8 = vpop.f32.mrb[138].mxu0 }
 0x2bf   : > { %v3682_v14 = vadd.f32 %v4116_v43, %v3659_v15  ;;  %v3621_v52 = vpop.f32.mrb[139].mxu0 }
 0x2c0   : > { %v3680_v18 = vadd.f32 %v4116_v43, %v3657_v0 }
 0x2c1   : > { %v3698_v62 = vmax.f32 %v3682_v14, 0.0 }
 0x2c2   : > { %v3696_v46 = vmax.f32 %v3680_v18, 0.0 }
 0x2c4   : > { %v4136_v1 = vpack.c.bf16 %v3698_v62, %v3696_v46  ;;  %v4768_v17 = vpop.f32.mrb[140].mxu0 }
 0x2c5   : > { %v3663_v13 = vadd.f32 %v4768_v17, %v3400_v53  ;;  %v3634_v39 = vpop.f32.mrb[141].mxu0 }
 0x2c6   : > { %4144 = vst [vmem:[%s6059_s27 + $0x10] sm:$0xff] %v4136_v1   ;;  %v3661_v44 = vadd.f32 %v3634_v39, %v3398_v24  ;;  %v4769_v7 = vpop.f32.mrb[142].mxu0 }
 0x2c7   : > { %v3686_v29 = vadd.f32 %v4116_v43, %v3663_v13  ;;  %v3637_v2 = vpop.f32.mrb[143].mxu0 }
 0x2c8   : > { %v3684_v59 = vadd.f32 %v4116_v43, %v3661_v44 }
 0x2c9   : > { %v3702_v63 = vmax.f32 %v3686_v29, 0.0 }
 0x2ca   : > { %v3700_v47 = vmax.f32 %v3684_v59, 0.0 }
 0x2cc   : > { %v4141_v12 = vpack.c.bf16 %v3702_v63, %v3700_v47 }
 0x2ce   : > { %4145 = vst [vmem:[%s6059_s27 + $0x18] sm:$0xff] %v4141_v12  }
 0x2cf   : > { %5008 = shalt.err (!%p5005_p6)
}
 0x2d0   : > { %s5009_s14 = scalar_lea.hbm %s6071_s17, 512  ;;  %s5013_s20 = scalar_lea.hbm %s6128_s6, 1024 }
 0x2d1   : > { %p5010_p7 = scmp.ne.s32.totalorder %s6071_s17, %s5009_s14  ;;  %p5014_p0 = scmp.lt.u32.totalorder %s6071_s17, %s6128_s6 }
 0x2d2   : > { %p5015_p2 = scmp.lt.u32.totalorder %s5013_s20, %s5009_s14  ;;  %p5017_p8 = scmp.lt.u32.totalorder %s5009_s14, %s6071_s17 }
 0x2d3   : > { %p5011_p9 = pnand %p5010_p7, %p6154_p10 }
 0x2d4   : > { %p5016_p4 = por %p5015_p2, %p5014_p0 }
 0x2d5   : > { %p5012_p12 = pneg %p5011_p9 }
 0x2d6   : > { %p5018_p11 = por %p5017_p8, %p5016_p4 }
 0x2d8   : > { %p5019_p13 = pnand %p5018_p11, %p5012_p12 }
 0x2da   : > { %5022 = shalt.err (!%p5019_p13)
}
 0x2db   : > { %s5086_s13 = smov 64   ;;  %s5087_s16 = smov 4  }
 0x2dc   : > { %4777 = dma.vmem_to_hbm [thread:$0]  (%p6154_p10), %s6066_s30, 512, %s6071_s17, %s6076_s28, %s5086_s13, %s5086_s13, %s5087_s16  }
 0x2dd PF: > { %p4789_p1 = scmp.ge.s32.totalorder %s5077_s26, 2  ;;  %s3751_s18 = sand.u32 1, %s5057_s21  }
 0x2de   : > { %p6155_p3 = scmp.ne.s32.totalorder %s6134_s9, 0  ;;  %s3752_s24 = scalar_lea.sflag [#allocation5], %s3751_s18 }
 0x2e0   : > { %p4784_p5 = pnand %p4789_p1, %p6155_p3 }
 0x2e2   : > { %5052 = dma.done.wait (!%p4784_p5), %s3752_s24, 512  }
 0x2e3   : > { %5054 = vsyncadd (!%p4784_p5), %s3752_s24, 4294966784  ;;  %s20_s26 = sadd.s32 1, %s5077_s26   ;;  %s6156_s21 = smov %s5061_s22 }
 0x2e4   : > { %p17_p6 = scmp.ge.s32.totalorder %s20_s26, 4   ;;  %s6157_s22 = smov %s5065_s23 }
 0x2e5   : > { %s6158_s23 = smov %s5176_s10  ;;  %s6159_s24 = smov %s5073_s25 }
 0x2e6   : > { %s6160_s25 = smov %s6162_s29  ;;  %19 = sbr.rel (!%p17_p6) target bundleno = 5 (0x5), region = 103 }
 0x2ed   :  { %3757 = vsyncpa [#allocation4], 1 }
 0x2ee   :  { %3759 = vsyncpa [#allocation4 + $0x1], 1 }
 0x2ef   :  { %3760 = vsyncpa [#allocation5], 1 }
 0x2f0   :  { %3762 = vsyncpa [#allocation5 + $0x1], 1 }

</bundles_post_ra>
